<compile_context>
chip_gen: v7x
topology: tpu7x:2x2x1
jax: 0.10.0
libtpu: 0.0.40
codegen_flags: <defaults>
</compile_context>

<pallas_src>
from functools import partial

import jax
import jax.numpy as jnp
from jax import lax
from jax.experimental import pallas as pl
from jax.experimental.pallas import tpu as pltpu

EPS = 1e-5  # PyTorch InstanceNorm3d default eps (affine=False, no running stats)


def _instance_norm(x):
    # x: (C, S) f32 -- normalize over the spatial (lane) axis, per channel.
    # Two-pass statistics (mean, then E[(x-mean)^2]); data is VMEM-resident so
    # the extra pass is cheap and it is cancellation-safe.
    m = jnp.mean(x, axis=1, keepdims=True)
    xc = x - m
    var = jnp.mean(xc * xc, axis=1, keepdims=True)
    return xc * lax.rsqrt(var + EPS)


def _conv_block_kernel(mask_ref, x_ref, w0_ref, w1_ref, w2_ref, w3_ref,
                       out_ref, slab_ref, *, k, pad, D, H, W, Chp):
    S = D * H * W
    HW = H * W
    k2 = k * k

    x = x_ref[0].astype(jnp.float32)                          # (Cin, S)

    # ---- main path: conv1 (1x1x1) + InstanceNorm + ReLU ----
    h = jnp.dot(w1_ref[...], x, preferred_element_type=jnp.float32)
    h = jnp.maximum(_instance_norm(h), 0.0)                   # (Chp, S) f32

    # ---- conv2 (k x k x k, 'same'): roll + precomputed mask along the flat
    # spatial lane axis.  Per-kd accumulation: k^2 taps are written straight
    # into the bf16 scratch slab (no concat copy), then one MXU matmul per kd
    # with K = k^2 * Chp, accumulated in f32.
    h2 = jnp.zeros((Chp, S), jnp.float32)
    for kd in range(k):
        dd = kd - pad
        for kh in range(k):
            dh = kh - pad
            for kw in range(k):
                dw = kw - pad
                t = kh * k + kw
                off = dd * HW + dh * W + dw
                if dd == 0 and dh == 0 and dw == 0:
                    tap = h                                   # center tap: no roll/mask
                else:
                    # tap[c, s] = h[c, s + off] (zero outside the volume)
                    rolled = pltpu.roll(h, (-off) % S, 1)
                    tap = rolled * mask_ref[pl.ds(kd * k2 + t, 1), :]
                slab_ref[pl.ds(t * Chp, Chp), :] = tap.astype(jnp.bfloat16)
        h2 = h2 + jnp.dot(w2_ref[kd], slab_ref[...],
                          preferred_element_type=jnp.float32)
    h2 = jnp.maximum(_instance_norm(h2), 0.0)                 # (Chp, S)

    # ---- conv3 (1x1x1) + InstanceNorm ----
    out = _instance_norm(jnp.dot(w3_ref[...], h2,
                                 preferred_element_type=jnp.float32))

    # ---- shortcut path last (short live range): conv0 (1x1x1) + InstanceNorm
    sc = _instance_norm(jnp.dot(w0_ref[...], x,
                                preferred_element_type=jnp.float32))

    out_ref[0] = jnp.maximum(out + sc, 0.0).astype(out_ref.dtype)


def _vmem_limit_bytes(Cin, Chp, Cout, S, k):
    f32 = 4
    blocks = 2 * (Cin + Cout) * S * f32                 # double-buffered x/out blocks
    masks = 2 * (k ** 3) * S * f32                      # constant mask input (x2 buffers)
    slab = (k * k * Chp) * S * 2                        # bf16 scratch slab (single)
    inter = 8 * max(Chp, Cout) * S * f32                # h, h2, out, sc, temps
    weights = 2 * ((Cout * Cin + Chp * Cin + Cout * Chp) * f32
                   + (k ** 3) * Chp * Chp * 2)
    need = blocks + masks + slab + inter + weights
    try:
        cap = pltpu.get_tpu_info().vmem_capacity_bytes  # generation-aware cap
    except Exception:
        cap = 64 * 1024 * 1024                          # conservative (v7x physical)
    return int(min(cap * 3 // 4, max(2 * need, 16 * 1024 * 1024)))


def conv_block_forward(x_ncdhw, params, kernel_size, stride=1):
    """x_ncdhw: (N, C_in, D, H, W)  ->  (N, C_out, D', H', W')."""
    w0, b0, w1, b1, w2, b2, w3, b3 = params
    # Bias before affine-less InstanceNorm is a mathematical no-op -> dropped.
    del b0, b1, b2, b3
    # conv0 and conv1 share the same stride -> subsample once up front.
    # TODO(synk): fold stride subsampling into the input BlockSpec instead of
    #             materializing the sliced tensor when stride > 1.
    if stride != 1:
        x_ncdhw = x_ncdhw[:, :, ::stride, ::stride, ::stride]

    N, Cin, D, H, W = x_ncdhw.shape
    Chid = w1.shape[1]
    Cout = w0.shape[1]
    S = D * H * W
    k = kernel_size
    # TODO(synk): even kernel_size (asymmetric PyTorch 'same' padding) not handled.
    pad = k // 2
    # Pad hidden channels to the bf16 sublane multiple (16): keeps the bf16
    # slab stores tile-aligned; zero-padded channels stay exactly zero through
    # IN/ReLU so semantics are unchanged.
    Chp = ((Chid + 15) // 16) * 16

    # Channels-first weights: y = W @ x with x (Cin, S).
    w0t = jnp.transpose(w0).astype(jnp.float32)                       # (Cout, Cin)
    w1p = jnp.zeros((Cin, Chp), jnp.float32).at[:, :Chid].set(w1)
    w1t = jnp.transpose(w1p)                                          # (Chp, Cin)
    w2p = jnp.zeros((k, k, k, Chp, Chp), jnp.float32).at[:, :, :, :Chid, :Chid].set(w2)
    # (kd,kh,kw,ci,co) -> (kd, co, kh, kw, ci) -> (k, Chp, k^2*Chp): matches the
    # per-kd tap stacking order in the kernel.  bf16 feed for the MXU.
    w2f = jnp.transpose(w2p, (0, 4, 1, 2, 3)).reshape(k, Chp, k * k * Chp)
    w2f = w2f.astype(jnp.bfloat16)
    w3p = jnp.zeros((Chp, Cout), jnp.float32).at[:Chid, :].set(w3)
    w3t = jnp.transpose(w3p)                                          # (Cout, Chp)

    # 'same'-padding boundary masks for all k^3 taps, hoisted out of the grid
    # loop (geometry only, batch-invariant).
    idx = jnp.arange(S, dtype=jnp.int32)
    d_i = idx // (H * W)
    h_i = (idx // W) % H
    w_i = idx % W
    rows = []
    for kd in range(k):
        dd = kd - pad
        for kh in range(k):
            dh = kh - pad
            for kw in range(k):
                dw = kw - pad
                rows.append((d_i + dd >= 0) & (d_i + dd < D) &
                            (h_i + dh >= 0) & (h_i + dh < H) &
                            (w_i + dw >= 0) & (w_i + dw < W))
    masks = jnp.stack(rows).astype(jnp.float32)                       # (k^3, S)

    # Free, contiguous reshape: (N, C, D, H, W) -> (N, C, S).  S sits on the
    # lane axis -> lane-dense DMAs and unmasked stores.
    x_flat = x_ncdhw.reshape(N, Cin, S)

    def full_spec(a):
        zeros = (0,) * a.ndim
        return pl.BlockSpec(a.shape, lambda n: zeros)
    # TODO(synk): give the constant weight/mask BlockSpecs pipeline_mode=
    #             pl.Buffered(1) once single-buffered constant inputs are
    #             verified on the target jax version (saves the 2x buffer).

    kern = partial(_conv_block_kernel, k=k, pad=pad, D=D, H=H, W=W, Chp=Chp)
    out_flat = pl.pallas_call(
        kern,
        out_shape=jax.ShapeDtypeStruct((N, Cout, S), x_flat.dtype),
        grid_spec=pltpu.PrefetchScalarGridSpec(
            num_scalar_prefetch=0,
            grid=(N,),
            in_specs=[full_spec(masks),
                      pl.BlockSpec((1, Cin, S), lambda n: (n, 0, 0)),
                      full_spec(w0t), full_spec(w1t),
                      full_spec(w2f), full_spec(w3t)],
            out_specs=pl.BlockSpec((1, Cout, S), lambda n: (n, 0, 0)),
            scratch_shapes=[pltpu.VMEM((k * k * Chp, S), jnp.bfloat16)]),
        compiler_params=pltpu.CompilerParams(
            # Batch axis is independent -> shard across v7x's 2 TensorCores.
            dimension_semantics=("parallel",),
            vmem_limit_bytes=_vmem_limit_bytes(Cin, Chp, Cout, S, k)),
    )(masks, x_flat, w0t, w1t, w2f, w3t)
    # TODO(synk): for production-scale volumes (esp. v7x's 64 MiB VMEM) add a
    #             halo'd D-slab grid axis with streamed InstanceNorm stats, and
    #             process several batch elements per grid step when per-sample
    #             volumes are small (amortize ~0.35us/step + MXU fill/drain).

    return out_flat.reshape(N, Cout, D, H, W)


def ref_forward(x, params, kernel_size, stride):
    """Pure-JAX reference matching the PyTorch module (NCDHW), biases included."""
    w0, b0, w1, b1, w2, b2, w3, b3 = params

    def conv1x1(x, w, b):
        return jnp.einsum('ncdhw,co->nodhw', x, w) + b[0][None, :, None, None, None]

    def inorm(x):
        m = jnp.mean(x, axis=(2, 3, 4), keepdims=True)
        v = jnp.mean((x - m) ** 2, axis=(2, 3, 4), keepdims=True)
        return (x - m) / jnp.sqrt(v + EPS)

    xs = x[:, :, ::stride, ::stride, ::stride]
    sc = inorm(conv1x1(xs, w0, b0))
    h = jax.nn.relu(inorm(conv1x1(xs, w1, b1)))
    w2_oidhw = jnp.transpose(w2, (4, 3, 0, 1, 2))  # (k,k,k,Cin,Cout) -> OIDHW
    h2 = lax.conv_general_dilated(h, w2_oidhw, (1, 1, 1), 'SAME',
                                  dimension_numbers=('NCDHW', 'OIDHW', 'NCDHW'))
    h2 = h2 + b2[0][None, :, None, None, None]
    h2 = jax.nn.relu(inorm(h2))
    out = inorm(conv1x1(h2, w3, b3))
    return jax.nn.relu(out + sc)


if __name__ == "__main__":
    N, Cin, Chid, Cout = 2, 4, 8, 8
    D = H = W = 8          # S = 512, a multiple of 128 (lane-dense)
    ks = 3
    stride = 1

    keys = jax.random.split(jax.random.PRNGKey(0), 9)
    x = jax.random.normal(keys[0], (N, Cin, D, H, W), jnp.float32)
    # deterministic synthetic parameters (kernel-layout weights: (..., Cin, Cout))
    w0 = jax.random.normal(keys[1], (Cin, Cout), jnp.float32) * 0.1
    b0 = jax.random.normal(keys[2], (1, Cout), jnp.float32) * 0.1
    w1 = jax.random.normal(keys[3], (Cin, Chid), jnp.float32) * 0.1
    b1 = jax.random.normal(keys[4], (1, Chid), jnp.float32) * 0.1
    w2 = jax.random.normal(keys[5], (ks, ks, ks, Chid, Chid), jnp.float32) * 0.1
    b2 = jax.random.normal(keys[6], (1, Chid), jnp.float32) * 0.1
    w3 = jax.random.normal(keys[7], (Chid, Cout), jnp.float32) * 0.1
    b3 = jax.random.normal(keys[8], (1, Cout), jnp.float32) * 0.1
    params = (w0, b0, w1, b1, w2, b2, w3, b3)

    y = conv_block_forward(x, params, ks, stride=stride)
    y = jax.block_until_ready(y)

    y_ref = ref_forward(x, params, ks, stride)
    err = float(jnp.max(jnp.abs(y - y_ref)))
    assert y.shape == (N, Cout, D, H, W), y.shape
    # Tolerance loosened vs. a pure-f32 kernel: conv2 MXU is fed in bf16
    # (InstanceNorm immediately renormalizes, so the error stays benign).
    assert err < 5e-2, f"max abs error {err}"
    print("KERNEL_OK")
</pallas_src>

<mosaic_0001>
module attributes {stable_mosaic.version = 11 : i64} {
  func.func @_conv_block_kernel(%arg0: i32, %arg1: memref<27x512xf32, #tpu.memory_space<vmem>>, %arg2: memref<1x4x512xf32, #tpu.memory_space<vmem>>, %arg3: memref<8x4xf32, #tpu.memory_space<vmem>>, %arg4: memref<16x4xf32, #tpu.memory_space<vmem>>, %arg5: memref<3x16x144xbf16, #tpu.memory_space<vmem>>, %arg6: memref<8x16xf32, #tpu.memory_space<vmem>>, %arg7: memref<1x8x512xf32, #tpu.memory_space<vmem>>, %arg8: memref<144x512xbf16, #tpu.memory_space<vmem>>) attributes {dimension_semantics = [#tpu.dimension_semantics<parallel>], iteration_bounds = array<i64: 2>, scalar_prefetch = 0 : i64, scratch_operands = 1 : i64, tpu.core_type = #tpu.core_type<tc>, window_params = [{pipeline_mode = #tpu.pipeline_mode<synchronous>, transform_indices = @transform_0, window_bounds = array<i64: 27, 512>}, {transform_indices = @transform_1, window_bounds = array<i64: 1, 4, 512>}, {pipeline_mode = #tpu.pipeline_mode<synchronous>, transform_indices = @transform_2, window_bounds = array<i64: 8, 4>}, {pipeline_mode = #tpu.pipeline_mode<synchronous>, transform_indices = @transform_3, window_bounds = array<i64: 16, 4>}, {pipeline_mode = #tpu.pipeline_mode<synchronous>, transform_indices = @transform_4, window_bounds = array<i64: 3, 16, 144>}, {pipeline_mode = #tpu.pipeline_mode<synchronous>, transform_indices = @transform_5, window_bounds = array<i64: 8, 16>}, {transform_indices = @transform_6, window_bounds = array<i64: 1, 8, 512>}]} {
    %c0 = arith.constant 0 : index
    %c0_0 = arith.constant 0 : index
    %c0_1 = arith.constant 0 : index
    %0 = vector.load %arg2[%c0, %c0_0, %c0_1] : memref<1x4x512xf32, #tpu.memory_space<vmem>>, vector<1x4x512xf32>
    %1 = vector.shape_cast %0 : vector<1x4x512xf32> to vector<4x512xf32>
    %c0_2 = arith.constant 0 : index
    %c0_3 = arith.constant 0 : index
    %2 = vector.load %arg4[%c0_2, %c0_3] : memref<16x4xf32, #tpu.memory_space<vmem>>, vector<16x4xf32>
    %cst = arith.constant dense<0.000000e+00> : vector<16x512xf32>
    %3 = tpu.matmul %2, %1, %cst {dimension_numbers = #tpu.dot_dimension_numbers<[1], [0], [0], [1], [0, 0, 1, 1], [], []>} : vector<16x4xf32>, vector<4x512xf32>, vector<16x512xf32> -> vector<16x512xf32>
    %cst_4 = arith.constant dense<0.000000e+00> : vector<16xf32>
    %4 = vector.multi_reduction <add>, %3, %cst_4 [1] : vector<16x512xf32> to vector<16xf32>
    %5 = vector.shape_cast %4 : vector<16xf32> to vector<16x1xf32>
    %cst_5 = arith.constant 5.120000e+02 : f32
    %6 = vector.broadcast %cst_5 : f32 to vector<16x1xf32>
    %7 = arith.divf %5, %6 : vector<16x1xf32>
    %8 = vector.broadcast %7 : vector<16x1xf32> to vector<16x512xf32>
    %9 = arith.subf %3, %8 : vector<16x512xf32>
    %10 = arith.mulf %9, %9 : vector<16x512xf32>
    %cst_6 = arith.constant dense<0.000000e+00> : vector<16xf32>
    %11 = vector.multi_reduction <add>, %10, %cst_6 [1] : vector<16x512xf32> to vector<16xf32>
    %12 = vector.shape_cast %11 : vector<16xf32> to vector<16x1xf32>
    %cst_7 = arith.constant 5.120000e+02 : f32
    %13 = vector.broadcast %cst_7 : f32 to vector<16x1xf32>
    %14 = arith.divf %12, %13 : vector<16x1xf32>
    %cst_8 = arith.constant 9.99999974E-6 : f32
    %15 = vector.broadcast %cst_8 : f32 to vector<16x1xf32>
    %16 = arith.addf %14, %15 : vector<16x1xf32>
    %17 = math.rsqrt %16 : vector<16x1xf32>
    %18 = vector.broadcast %17 : vector<16x1xf32> to vector<16x512xf32>
    %19 = arith.mulf %9, %18 : vector<16x512xf32>
    %cst_9 = arith.constant 0.000000e+00 : f32
    %20 = vector.broadcast %cst_9 : f32 to vector<16x512xf32>
    %21 = arith.maximumf %19, %20 : vector<16x512xf32>
    %cst_10 = arith.constant 0.000000e+00 : f32
    %22 = vector.broadcast %cst_10 : f32 to vector<16x512xf32>
    %c73_i32 = arith.constant 73 : i32
    %23 = tpu.dynamic_rotate %21 by %c73_i32 dim 1 : vector<16x512xf32>, i32 -> vector<16x512xf32>
    %c0_11 = arith.constant 0 : index
    %c0_12 = arith.constant 0 : index
    %24 = vector.load %arg1[%c0_11, %c0_12] : memref<27x512xf32, #tpu.memory_space<vmem>>, vector<1x512xf32>
    %25 = vector.broadcast %24 : vector<1x512xf32> to vector<16x512xf32>
    %26 = arith.mulf %23, %25 : vector<16x512xf32>
    %27 = arith.truncf %26 : vector<16x512xf32> to vector<16x512xbf16>
    %c0_13 = arith.constant 0 : index
    %c0_14 = arith.constant 0 : index
    %28 = vector.load %arg8[%c0_13, %c0_14] : memref<144x512xbf16, #tpu.memory_space<vmem>>, vector<16x512xbf16>
    tpu.vector_store %arg8[%c0_13, %c0_14], %27 {strides = array<i32>} : memref<144x512xbf16, #tpu.memory_space<vmem>>, vector<16x512xbf16>,
    %c72_i32 = arith.constant 72 : i32
    %29 = tpu.dynamic_rotate %21 by %c72_i32 dim 1 : vector<16x512xf32>, i32 -> vector<16x512xf32>
    %c1 = arith.constant 1 : index
    %c0_15 = arith.constant 0 : index
    %30 = vector.load %arg1[%c1, %c0_15] : memref<27x512xf32, #tpu.memory_space<vmem>>, vector<1x512xf32>
    %31 = vector.broadcast %30 : vector<1x512xf32> to vector<16x512xf32>
    %32 = arith.mulf %29, %31 : vector<16x512xf32>
    %33 = arith.truncf %32 : vector<16x512xf32> to vector<16x512xbf16>
    %c16 = arith.constant 16 : index
    %c0_16 = arith.constant 0 : index
    %34 = vector.load %arg8[%c16, %c0_16] : memref<144x512xbf16, #tpu.memory_space<vmem>>, vector<16x512xbf16>
    tpu.vector_store %arg8[%c16, %c0_16], %33 {strides = array<i32>} : memref<144x512xbf16, #tpu.memory_space<vmem>>, vector<16x512xbf16>,
    %c71_i32 = arith.constant 71 : i32
    %35 = tpu.dynamic_rotate %21 by %c71_i32 dim 1 : vector<16x512xf32>, i32 -> vector<16x512xf32>
    %c2 = arith.constant 2 : index
    %c0_17 = arith.constant 0 : index
    %36 = vector.load %arg1[%c2, %c0_17] : memref<27x512xf32, #tpu.memory_space<vmem>>, vector<1x512xf32>
    %37 = vector.broadcast %36 : vector<1x512xf32> to vector<16x512xf32>
    %38 = arith.mulf %35, %37 : vector<16x512xf32>
    %39 = arith.truncf %38 : vector<16x512xf32> to vector<16x512xbf16>
    %c32 = arith.constant 32 : index
    %c0_18 = arith.constant 0 : index
    %40 = vector.load %arg8[%c32, %c0_18] : memref<144x512xbf16, #tpu.memory_space<vmem>>, vector<16x512xbf16>
    tpu.vector_store %arg8[%c32, %c0_18], %39 {strides = array<i32>} : memref<144x512xbf16, #tpu.memory_space<vmem>>, vector<16x512xbf16>,
    %c65_i32 = arith.constant 65 : i32
    %41 = tpu.dynamic_rotate %21 by %c65_i32 dim 1 : vector<16x512xf32>, i32 -> vector<16x512xf32>
    %c3 = arith.constant 3 : index
    %c0_19 = arith.constant 0 : index
    %42 = vector.load %arg1[%c3, %c0_19] : memref<27x512xf32, #tpu.memory_space<vmem>>, vector<1x512xf32>
    %43 = vector.broadcast %42 : vector<1x512xf32> to vector<16x512xf32>
    %44 = arith.mulf %41, %43 : vector<16x512xf32>
    %45 = arith.truncf %44 : vector<16x512xf32> to vector<16x512xbf16>
    %c48 = arith.constant 48 : index
    %c0_20 = arith.constant 0 : index
    %46 = vector.load %arg8[%c48, %c0_20] : memref<144x512xbf16, #tpu.memory_space<vmem>>, vector<16x512xbf16>
    tpu.vector_store %arg8[%c48, %c0_20], %45 {strides = array<i32>} : memref<144x512xbf16, #tpu.memory_space<vmem>>, vector<16x512xbf16>,
    %c64_i32 = arith.constant 64 : i32
    %47 = tpu.dynamic_rotate %21 by %c64_i32 dim 1 : vector<16x512xf32>, i32 -> vector<16x512xf32>
    %c4 = arith.constant 4 : index
    %c0_21 = arith.constant 0 : index
    %48 = vector.load %arg1[%c4, %c0_21] : memref<27x512xf32, #tpu.memory_space<vmem>>, vector<1x512xf32>
    %49 = vector.broadcast %48 : vector<1x512xf32> to vector<16x512xf32>
    %50 = arith.mulf %47, %49 : vector<16x512xf32>
    %51 = arith.truncf %50 : vector<16x512xf32> to vector<16x512xbf16>
    %c64 = arith.constant 64 : index
    %c0_22 = arith.constant 0 : index
    %52 = vector.load %arg8[%c64, %c0_22] : memref<144x512xbf16, #tpu.memory_space<vmem>>, vector<16x512xbf16>
    tpu.vector_store %arg8[%c64, %c0_22], %51 {strides = array<i32>} : memref<144x512xbf16, #tpu.memory_space<vmem>>, vector<16x512xbf16>,
    %c63_i32 = arith.constant 63 : i32
    %53 = tpu.dynamic_rotate %21 by %c63_i32 dim 1 : vector<16x512xf32>, i32 -> vector<16x512xf32>
    %c5 = arith.constant 5 : index
    %c0_23 = arith.constant 0 : index
    %54 = vector.load %arg1[%c5, %c0_23] : memref<27x512xf32, #tpu.memory_space<vmem>>, vector<1x512xf32>
    %55 = vector.broadcast %54 : vector<1x512xf32> to vector<16x512xf32>
    %56 = arith.mulf %53, %55 : vector<16x512xf32>
    %57 = arith.truncf %56 : vector<16x512xf32> to vector<16x512xbf16>
    %c80 = arith.constant 80 : index
    %c0_24 = arith.constant 0 : index
    %58 = vector.load %arg8[%c80, %c0_24] : memref<144x512xbf16, #tpu.memory_space<vmem>>, vector<16x512xbf16>
    tpu.vector_store %arg8[%c80, %c0_24], %57 {strides = array<i32>} : memref<144x512xbf16, #tpu.memory_space<vmem>>, vector<16x512xbf16>,
    %c57_i32 = arith.constant 57 : i32
    %59 = tpu.dynamic_rotate %21 by %c57_i32 dim 1 : vector<16x512xf32>, i32 -> vector<16x512xf32>
    %c6 = arith.constant 6 : index
    %c0_25 = arith.constant 0 : index
    %60 = vector.load %arg1[%c6, %c0_25] : memref<27x512xf32, #tpu.memory_space<vmem>>, vector<1x512xf32>
    %61 = vector.broadcast %60 : vector<1x512xf32> to vector<16x512xf32>
    %62 = arith.mulf %59, %61 : vector<16x512xf32>
    %63 = arith.truncf %62 : vector<16x512xf32> to vector<16x512xbf16>
    %c96 = arith.constant 96 : index
    %c0_26 = arith.constant 0 : index
    %64 = vector.load %arg8[%c96, %c0_26] : memref<144x512xbf16, #tpu.memory_space<vmem>>, vector<16x512xbf16>
    tpu.vector_store %arg8[%c96, %c0_26], %63 {strides = array<i32>} : memref<144x512xbf16, #tpu.memory_space<vmem>>, vector<16x512xbf16>,
    %c56_i32 = arith.constant 56 : i32
    %65 = tpu.dynamic_rotate %21 by %c56_i32 dim 1 : vector<16x512xf32>, i32 -> vector<16x512xf32>
    %c7 = arith.constant 7 : index
    %c0_27 = arith.constant 0 : index
    %66 = vector.load %arg1[%c7, %c0_27] : memref<27x512xf32, #tpu.memory_space<vmem>>, vector<1x512xf32>
    %67 = vector.broadcast %66 : vector<1x512xf32> to vector<16x512xf32>
    %68 = arith.mulf %65, %67 : vector<16x512xf32>
    %69 = arith.truncf %68 : vector<16x512xf32> to vector<16x512xbf16>
    %c112 = arith.constant 112 : index
    %c0_28 = arith.constant 0 : index
    %70 = vector.load %arg8[%c112, %c0_28] : memref<144x512xbf16, #tpu.memory_space<vmem>>, vector<16x512xbf16>
    tpu.vector_store %arg8[%c112, %c0_28], %69 {strides = array<i32>} : memref<144x512xbf16, #tpu.memory_space<vmem>>, vector<16x512xbf16>,
    %c55_i32 = arith.constant 55 : i32
    %71 = tpu.dynamic_rotate %21 by %c55_i32 dim 1 : vector<16x512xf32>, i32 -> vector<16x512xf32>
    %c8 = arith.constant 8 : index
    %c0_29 = arith.constant 0 : index
    %72 = vector.load %arg1[%c8, %c0_29] : memref<27x512xf32, #tpu.memory_space<vmem>>, vector<1x512xf32>
    %73 = vector.broadcast %72 : vector<1x512xf32> to vector<16x512xf32>
    %74 = arith.mulf %71, %73 : vector<16x512xf32>
    %75 = arith.truncf %74 : vector<16x512xf32> to vector<16x512xbf16>
    %c128 = arith.constant 128 : index
    %c0_30 = arith.constant 0 : index
    %76 = vector.load %arg8[%c128, %c0_30] : memref<144x512xbf16, #tpu.memory_space<vmem>>, vector<16x512xbf16>
    tpu.vector_store %arg8[%c128, %c0_30], %75 {strides = array<i32>} : memref<144x512xbf16, #tpu.memory_space<vmem>>, vector<16x512xbf16>,
    %c0_31 = arith.constant 0 : index
    %c0_32 = arith.constant 0 : index
    %c0_33 = arith.constant 0 : index
    %77 = vector.load %arg5[%c0_31, %c0_32, %c0_33] : memref<3x16x144xbf16, #tpu.memory_space<vmem>>, vector<1x16x144xbf16>
    %78 = vector.shape_cast %77 : vector<1x16x144xbf16> to vector<16x144xbf16>
    %c0_34 = arith.constant 0 : index
    %c0_35 = arith.constant 0 : index
    %79 = vector.load %arg8[%c0_34, %c0_35] : memref<144x512xbf16, #tpu.memory_space<vmem>>, vector<144x512xbf16>
    %cst_36 = arith.constant dense<0.000000e+00> : vector<16x512xf32>
    %80 = tpu.matmul %78, %79, %cst_36 {dimension_numbers = #tpu.dot_dimension_numbers<[1], [0], [0], [1], [0, 0, 1, 1], [], []>} : vector<16x144xbf16>, vector<144x512xbf16>, vector<16x512xf32> -> vector<16x512xf32>
    %81 = arith.addf %22, %80 : vector<16x512xf32>
    %c9_i32 = arith.constant 9 : i32
    %82 = tpu.dynamic_rotate %21 by %c9_i32 dim 1 : vector<16x512xf32>, i32 -> vector<16x512xf32>
    %c9 = arith.constant 9 : index
    %c0_37 = arith.constant 0 : index
    %83 = vector.load %arg1[%c9, %c0_37] : memref<27x512xf32, #tpu.memory_space<vmem>>, vector<1x512xf32>
    %84 = vector.broadcast %83 : vector<1x512xf32> to vector<16x512xf32>
    %85 = arith.mulf %82, %84 : vector<16x512xf32>
    %86 = arith.truncf %85 : vector<16x512xf32> to vector<16x512xbf16>
    %c0_38 = arith.constant 0 : index
    %c0_39 = arith.constant 0 : index
    %87 = vector.load %arg8[%c0_38, %c0_39] : memref<144x512xbf16, #tpu.memory_space<vmem>>, vector<16x512xbf16>
    tpu.vector_store %arg8[%c0_38, %c0_39], %86 {strides = array<i32>} : memref<144x512xbf16, #tpu.memory_space<vmem>>, vector<16x512xbf16>,
    %c8_i32 = arith.constant 8 : i32
    %88 = tpu.dynamic_rotate %21 by %c8_i32 dim 1 : vector<16x512xf32>, i32 -> vector<16x512xf32>
    %c10 = arith.constant 10 : index
    %c0_40 = arith.constant 0 : index
    %89 = vector.load %arg1[%c10, %c0_40] : memref<27x512xf32, #tpu.memory_space<vmem>>, vector<1x512xf32>
    %90 = vector.broadcast %89 : vector<1x512xf32> to vector<16x512xf32>
    %91 = arith.mulf %88, %90 : vector<16x512xf32>
    %92 = arith.truncf %91 : vector<16x512xf32> to vector<16x512xbf16>
    %c16_41 = arith.constant 16 : index
    %c0_42 = arith.constant 0 : index
    %93 = vector.load %arg8[%c16_41, %c0_42] : memref<144x512xbf16, #tpu.memory_space<vmem>>, vector<16x512xbf16>
    tpu.vector_store %arg8[%c16_41, %c0_42], %92 {strides = array<i32>} : memref<144x512xbf16, #tpu.memory_space<vmem>>, vector<16x512xbf16>,
    %c7_i32 = arith.constant 7 : i32
    %94 = tpu.dynamic_rotate %21 by %c7_i32 dim 1 : vector<16x512xf32>, i32 -> vector<16x512xf32>
    %c11 = arith.constant 11 : index
    %c0_43 = arith.constant 0 : index
    %95 = vector.load %arg1[%c11, %c0_43] : memref<27x512xf32, #tpu.memory_space<vmem>>, vector<1x512xf32>
    %96 = vector.broadcast %95 : vector<1x512xf32> to vector<16x512xf32>
    %97 = arith.mulf %94, %96 : vector<16x512xf32>
    %98 = arith.truncf %97 : vector<16x512xf32> to vector<16x512xbf16>
    %c32_44 = arith.constant 32 : index
    %c0_45 = arith.constant 0 : index
    %99 = vector.load %arg8[%c32_44, %c0_45] : memref<144x512xbf16, #tpu.memory_space<vmem>>, vector<16x512xbf16>
    tpu.vector_store %arg8[%c32_44, %c0_45], %98 {strides = array<i32>} : memref<144x512xbf16, #tpu.memory_space<vmem>>, vector<16x512xbf16>,
    %c1_i32 = arith.constant 1 : i32
    %100 = tpu.dynamic_rotate %21 by %c1_i32 dim 1 : vector<16x512xf32>, i32 -> vector<16x512xf32>
    %c12 = arith.constant 12 : index
    %c0_46 = arith.constant 0 : index
    %101 = vector.load %arg1[%c12, %c0_46] : memref<27x512xf32, #tpu.memory_space<vmem>>, vector<1x512xf32>
    %102 = vector.broadcast %101 : vector<1x512xf32> to vector<16x512xf32>
    %103 = arith.mulf %100, %102 : vector<16x512xf32>
    %104 = arith.truncf %103 : vector<16x512xf32> to vector<16x512xbf16>
    %c48_47 = arith.constant 48 : index
    %c0_48 = arith.constant 0 : index
    %105 = vector.load %arg8[%c48_47, %c0_48] : memref<144x512xbf16, #tpu.memory_space<vmem>>, vector<16x512xbf16>
    tpu.vector_store %arg8[%c48_47, %c0_48], %104 {strides = array<i32>} : memref<144x512xbf16, #tpu.memory_space<vmem>>, vector<16x512xbf16>,
    %106 = arith.truncf %21 : vector<16x512xf32> to vector<16x512xbf16>
    %c64_49 = arith.constant 64 : index
    %c0_50 = arith.constant 0 : index
    %107 = vector.load %arg8[%c64_49, %c0_50] : memref<144x512xbf16, #tpu.memory_space<vmem>>, vector<16x512xbf16>
    tpu.vector_store %arg8[%c64_49, %c0_50], %106 {strides = array<i32>} : memref<144x512xbf16, #tpu.memory_space<vmem>>, vector<16x512xbf16>,
    %c511_i32 = arith.constant 511 : i32
    %108 = tpu.dynamic_rotate %21 by %c511_i32 dim 1 : vector<16x512xf32>, i32 -> vector<16x512xf32>
    %c14 = arith.constant 14 : index
    %c0_51 = arith.constant 0 : index
    %109 = vector.load %arg1[%c14, %c0_51] : memref<27x512xf32, #tpu.memory_space<vmem>>, vector<1x512xf32>
    %110 = vector.broadcast %109 : vector<1x512xf32> to vector<16x512xf32>
    %111 = arith.mulf %108, %110 : vector<16x512xf32>
    %112 = arith.truncf %111 : vector<16x512xf32> to vector<16x512xbf16>
    %c80_52 = arith.constant 80 : index
    %c0_53 = arith.constant 0 : index
    %113 = vector.load %arg8[%c80_52, %c0_53] : memref<144x512xbf16, #tpu.memory_space<vmem>>, vector<16x512xbf16>
    tpu.vector_store %arg8[%c80_52, %c0_53], %112 {strides = array<i32>} : memref<144x512xbf16, #tpu.memory_space<vmem>>, vector<16x512xbf16>,
    %c505_i32 = arith.constant 505 : i32
    %114 = tpu.dynamic_rotate %21 by %c505_i32 dim 1 : vector<16x512xf32>, i32 -> vector<16x512xf32>
    %c15 = arith.constant 15 : index
    %c0_54 = arith.constant 0 : index
    %115 = vector.load %arg1[%c15, %c0_54] : memref<27x512xf32, #tpu.memory_space<vmem>>, vector<1x512xf32>
    %116 = vector.broadcast %115 : vector<1x512xf32> to vector<16x512xf32>
    %117 = arith.mulf %114, %116 : vector<16x512xf32>
    %118 = arith.truncf %117 : vector<16x512xf32> to vector<16x512xbf16>
    %c96_55 = arith.constant 96 : index
    %c0_56 = arith.constant 0 : index
    %119 = vector.load %arg8[%c96_55, %c0_56] : memref<144x512xbf16, #tpu.memory_space<vmem>>, vector<16x512xbf16>
    tpu.vector_store %arg8[%c96_55, %c0_56], %118 {strides = array<i32>} : memref<144x512xbf16, #tpu.memory_space<vmem>>, vector<16x512xbf16>,
    %c504_i32 = arith.constant 504 : i32
    %120 = tpu.dynamic_rotate %21 by %c504_i32 dim 1 : vector<16x512xf32>, i32 -> vector<16x512xf32>
    %c16_57 = arith.constant 16 : index
    %c0_58 = arith.constant 0 : index
    %121 = vector.load %arg1[%c16_57, %c0_58] : memref<27x512xf32, #tpu.memory_space<vmem>>, vector<1x512xf32>
    %122 = vector.broadcast %121 : vector<1x512xf32> to vector<16x512xf32>
    %123 = arith.mulf %120, %122 : vector<16x512xf32>
    %124 = arith.truncf %123 : vector<16x512xf32> to vector<16x512xbf16>
    %c112_59 = arith.constant 112 : index
    %c0_60 = arith.constant 0 : index
    %125 = vector.load %arg8[%c112_59, %c0_60] : memref<144x512xbf16, #tpu.memory_space<vmem>>, vector<16x512xbf16>
    tpu.vector_store %arg8[%c112_59, %c0_60], %124 {strides = array<i32>} : memref<144x512xbf16, #tpu.memory_space<vmem>>, vector<16x512xbf16>,
    %c503_i32 = arith.constant 503 : i32
    %126 = tpu.dynamic_rotate %21 by %c503_i32 dim 1 : vector<16x512xf32>, i32 -> vector<16x512xf32>
    %c17 = arith.constant 17 : index
    %c0_61 = arith.constant 0 : index
    %127 = vector.load %arg1[%c17, %c0_61] : memref<27x512xf32, #tpu.memory_space<vmem>>, vector<1x512xf32>
    %128 = vector.broadcast %127 : vector<1x512xf32> to vector<16x512xf32>
    %129 = arith.mulf %126, %128 : vector<16x512xf32>
    %130 = arith.truncf %129 : vector<16x512xf32> to vector<16x512xbf16>
    %c128_62 = arith.constant 128 : index
    %c0_63 = arith.constant 0 : index
    %131 = vector.load %arg8[%c128_62, %c0_63] : memref<144x512xbf16, #tpu.memory_space<vmem>>, vector<16x512xbf16>
    tpu.vector_store %arg8[%c128_62, %c0_63], %130 {strides = array<i32>} : memref<144x512xbf16, #tpu.memory_space<vmem>>, vector<16x512xbf16>,
    %c1_64 = arith.constant 1 : index
    %c0_65 = arith.constant 0 : index
    %c0_66 = arith.constant 0 : index
    %132 = vector.load %arg5[%c1_64, %c0_65, %c0_66] : memref<3x16x144xbf16, #tpu.memory_space<vmem>>, vector<1x16x144xbf16>
    %133 = vector.shape_cast %132 : vector<1x16x144xbf16> to vector<16x144xbf16>
    %c0_67 = arith.constant 0 : index
    %c0_68 = arith.constant 0 : index
    %134 = vector.load %arg8[%c0_67, %c0_68] : memref<144x512xbf16, #tpu.memory_space<vmem>>, vector<144x512xbf16>
    %cst_69 = arith.constant dense<0.000000e+00> : vector<16x512xf32>
    %135 = tpu.matmul %133, %134, %cst_69 {dimension_numbers = #tpu.dot_dimension_numbers<[1], [0], [0], [1], [0, 0, 1, 1], [], []>} : vector<16x144xbf16>, vector<144x512xbf16>, vector<16x512xf32> -> vector<16x512xf32>
    %136 = arith.addf %81, %135 : vector<16x512xf32>
    %c457_i32 = arith.constant 457 : i32
    %137 = tpu.dynamic_rotate %21 by %c457_i32 dim 1 : vector<16x512xf32>, i32 -> vector<16x512xf32>
    %c18 = arith.constant 18 : index
    %c0_70 = arith.constant 0 : index
    %138 = vector.load %arg1[%c18, %c0_70] : memref<27x512xf32, #tpu.memory_space<vmem>>, vector<1x512xf32>
    %139 = vector.broadcast %138 : vector<1x512xf32> to vector<16x512xf32>
    %140 = arith.mulf %137, %139 : vector<16x512xf32>
    %141 = arith.truncf %140 : vector<16x512xf32> to vector<16x512xbf16>
    %c0_71 = arith.constant 0 : index
    %c0_72 = arith.constant 0 : index
    %142 = vector.load %arg8[%c0_71, %c0_72] : memref<144x512xbf16, #tpu.memory_space<vmem>>, vector<16x512xbf16>
    tpu.vector_store %arg8[%c0_71, %c0_72], %141 {strides = array<i32>} : memref<144x512xbf16, #tpu.memory_space<vmem>>, vector<16x512xbf16>,
    %c456_i32 = arith.constant 456 : i32
    %143 = tpu.dynamic_rotate %21 by %c456_i32 dim 1 : vector<16x512xf32>, i32 -> vector<16x512xf32>
    %c19 = arith.constant 19 : index
    %c0_73 = arith.constant 0 : index
    %144 = vector.load %arg1[%c19, %c0_73] : memref<27x512xf32, #tpu.memory_space<vmem>>, vector<1x512xf32>
    %145 = vector.broadcast %144 : vector<1x512xf32> to vector<16x512xf32>
    %146 = arith.mulf %143, %145 : vector<16x512xf32>
    %147 = arith.truncf %146 : vector<16x512xf32> to vector<16x512xbf16>
    %c16_74 = arith.constant 16 : index
    %c0_75 = arith.constant 0 : index
    %148 = vector.load %arg8[%c16_74, %c0_75] : memref<144x512xbf16, #tpu.memory_space<vmem>>, vector<16x512xbf16>
    tpu.vector_store %arg8[%c16_74, %c0_75], %147 {strides = array<i32>} : memref<144x512xbf16, #tpu.memory_space<vmem>>, vector<16x512xbf16>,
    %c455_i32 = arith.constant 455 : i32
    %149 = tpu.dynamic_rotate %21 by %c455_i32 dim 1 : vector<16x512xf32>, i32 -> vector<16x512xf32>
    %c20 = arith.constant 20 : index
    %c0_76 = arith.constant 0 : index
    %150 = vector.load %arg1[%c20, %c0_76] : memref<27x512xf32, #tpu.memory_space<vmem>>, vector<1x512xf32>
    %151 = vector.broadcast %150 : vector<1x512xf32> to vector<16x512xf32>
    %152 = arith.mulf %149, %151 : vector<16x512xf32>
    %153 = arith.truncf %152 : vector<16x512xf32> to vector<16x512xbf16>
    %c32_77 = arith.constant 32 : index
    %c0_78 = arith.constant 0 : index
    %154 = vector.load %arg8[%c32_77, %c0_78] : memref<144x512xbf16, #tpu.memory_space<vmem>>, vector<16x512xbf16>
    tpu.vector_store %arg8[%c32_77, %c0_78], %153 {strides = array<i32>} : memref<144x512xbf16, #tpu.memory_space<vmem>>, vector<16x512xbf16>,
    %c449_i32 = arith.constant 449 : i32
    %155 = tpu.dynamic_rotate %21 by %c449_i32 dim 1 : vector<16x512xf32>, i32 -> vector<16x512xf32>
    %c21 = arith.constant 21 : index
    %c0_79 = arith.constant 0 : index
    %156 = vector.load %arg1[%c21, %c0_79] : memref<27x512xf32, #tpu.memory_space<vmem>>, vector<1x512xf32>
    %157 = vector.broadcast %156 : vector<1x512xf32> to vector<16x512xf32>
    %158 = arith.mulf %155, %157 : vector<16x512xf32>
    %159 = arith.truncf %158 : vector<16x512xf32> to vector<16x512xbf16>
    %c48_80 = arith.constant 48 : index
    %c0_81 = arith.constant 0 : index
    %160 = vector.load %arg8[%c48_80, %c0_81] : memref<144x512xbf16, #tpu.memory_space<vmem>>, vector<16x512xbf16>
    tpu.vector_store %arg8[%c48_80, %c0_81], %159 {strides = array<i32>} : memref<144x512xbf16, #tpu.memory_space<vmem>>, vector<16x512xbf16>,
    %c448_i32 = arith.constant 448 : i32
    %161 = tpu.dynamic_rotate %21 by %c448_i32 dim 1 : vector<16x512xf32>, i32 -> vector<16x512xf32>
    %c22 = arith.constant 22 : index
    %c0_82 = arith.constant 0 : index
    %162 = vector.load %arg1[%c22, %c0_82] : memref<27x512xf32, #tpu.memory_space<vmem>>, vector<1x512xf32>
    %163 = vector.broadcast %162 : vector<1x512xf32> to vector<16x512xf32>
    %164 = arith.mulf %161, %163 : vector<16x512xf32>
    %165 = arith.truncf %164 : vector<16x512xf32> to vector<16x512xbf16>
    %c64_83 = arith.constant 64 : index
    %c0_84 = arith.constant 0 : index
    %166 = vector.load %arg8[%c64_83, %c0_84] : memref<144x512xbf16, #tpu.memory_space<vmem>>, vector<16x512xbf16>
    tpu.vector_store %arg8[%c64_83, %c0_84], %165 {strides = array<i32>} : memref<144x512xbf16, #tpu.memory_space<vmem>>, vector<16x512xbf16>,
    %c447_i32 = arith.constant 447 : i32
    %167 = tpu.dynamic_rotate %21 by %c447_i32 dim 1 : vector<16x512xf32>, i32 -> vector<16x512xf32>
    %c23 = arith.constant 23 : index
    %c0_85 = arith.constant 0 : index
    %168 = vector.load %arg1[%c23, %c0_85] : memref<27x512xf32, #tpu.memory_space<vmem>>, vector<1x512xf32>
    %169 = vector.broadcast %168 : vector<1x512xf32> to vector<16x512xf32>
    %170 = arith.mulf %167, %169 : vector<16x512xf32>
    %171 = arith.truncf %170 : vector<16x512xf32> to vector<16x512xbf16>
    %c80_86 = arith.constant 80 : index
    %c0_87 = arith.constant 0 : index
    %172 = vector.load %arg8[%c80_86, %c0_87] : memref<144x512xbf16, #tpu.memory_space<vmem>>, vector<16x512xbf16>
    tpu.vector_store %arg8[%c80_86, %c0_87], %171 {strides = array<i32>} : memref<144x512xbf16, #tpu.memory_space<vmem>>, vector<16x512xbf16>,
    %c441_i32 = arith.constant 441 : i32
    %173 = tpu.dynamic_rotate %21 by %c441_i32 dim 1 : vector<16x512xf32>, i32 -> vector<16x512xf32>
    %c24 = arith.constant 24 : index
    %c0_88 = arith.constant 0 : index
    %174 = vector.load %arg1[%c24, %c0_88] : memref<27x512xf32, #tpu.memory_space<vmem>>, vector<1x512xf32>
    %175 = vector.broadcast %174 : vector<1x512xf32> to vector<16x512xf32>
    %176 = arith.mulf %173, %175 : vector<16x512xf32>
    %177 = arith.truncf %176 : vector<16x512xf32> to vector<16x512xbf16>
    %c96_89 = arith.constant 96 : index
    %c0_90 = arith.constant 0 : index
    %178 = vector.load %arg8[%c96_89, %c0_90] : memref<144x512xbf16, #tpu.memory_space<vmem>>, vector<16x512xbf16>
    tpu.vector_store %arg8[%c96_89, %c0_90], %177 {strides = array<i32>} : memref<144x512xbf16, #tpu.memory_space<vmem>>, vector<16x512xbf16>,
    %c440_i32 = arith.constant 440 : i32
    %179 = tpu.dynamic_rotate %21 by %c440_i32 dim 1 : vector<16x512xf32>, i32 -> vector<16x512xf32>
    %c25 = arith.constant 25 : index
    %c0_91 = arith.constant 0 : index
    %180 = vector.load %arg1[%c25, %c0_91] : memref<27x512xf32, #tpu.memory_space<vmem>>, vector<1x512xf32>
    %181 = vector.broadcast %180 : vector<1x512xf32> to vector<16x512xf32>
    %182 = arith.mulf %179, %181 : vector<16x512xf32>
    %183 = arith.truncf %182 : vector<16x512xf32> to vector<16x512xbf16>
    %c112_92 = arith.constant 112 : index
    %c0_93 = arith.constant 0 : index
    %184 = vector.load %arg8[%c112_92, %c0_93] : memref<144x512xbf16, #tpu.memory_space<vmem>>, vector<16x512xbf16>
    tpu.vector_store %arg8[%c112_92, %c0_93], %183 {strides = array<i32>} : memref<144x512xbf16, #tpu.memory_space<vmem>>, vector<16x512xbf16>,
    %c439_i32 = arith.constant 439 : i32
    %185 = tpu.dynamic_rotate %21 by %c439_i32 dim 1 : vector<16x512xf32>, i32 -> vector<16x512xf32>
    %c26 = arith.constant 26 : index
    %c0_94 = arith.constant 0 : index
    %186 = vector.load %arg1[%c26, %c0_94] : memref<27x512xf32, #tpu.memory_space<vmem>>, vector<1x512xf32>
    %187 = vector.broadcast %186 : vector<1x512xf32> to vector<16x512xf32>
    %188 = arith.mulf %185, %187 : vector<16x512xf32>
    %189 = arith.truncf %188 : vector<16x512xf32> to vector<16x512xbf16>
    %c128_95 = arith.constant 128 : index
    %c0_96 = arith.constant 0 : index
    %190 = vector.load %arg8[%c128_95, %c0_96] : memref<144x512xbf16, #tpu.memory_space<vmem>>, vector<16x512xbf16>
    tpu.vector_store %arg8[%c128_95, %c0_96], %189 {strides = array<i32>} : memref<144x512xbf16, #tpu.memory_space<vmem>>, vector<16x512xbf16>,
    %c2_97 = arith.constant 2 : index
    %c0_98 = arith.constant 0 : index
    %c0_99 = arith.constant 0 : index
    %191 = vector.load %arg5[%c2_97, %c0_98, %c0_99] : memref<3x16x144xbf16, #tpu.memory_space<vmem>>, vector<1x16x144xbf16>
    %192 = vector.shape_cast %191 : vector<1x16x144xbf16> to vector<16x144xbf16>
    %c0_100 = arith.constant 0 : index
    %c0_101 = arith.constant 0 : index
    %193 = vector.load %arg8[%c0_100, %c0_101] : memref<144x512xbf16, #tpu.memory_space<vmem>>, vector<144x512xbf16>
    %cst_102 = arith.constant dense<0.000000e+00> : vector<16x512xf32>
    %194 = tpu.matmul %192, %193, %cst_102 {dimension_numbers = #tpu.dot_dimension_numbers<[1], [0], [0], [1], [0, 0, 1, 1], [], []>} : vector<16x144xbf16>, vector<144x512xbf16>, vector<16x512xf32> -> vector<16x512xf32>
    %195 = arith.addf %136, %194 : vector<16x512xf32>
    %cst_103 = arith.constant dense<0.000000e+00> : vector<16xf32>
    %196 = vector.multi_reduction <add>, %195, %cst_103 [1] : vector<16x512xf32> to vector<16xf32>
    %197 = vector.shape_cast %196 : vector<16xf32> to vector<16x1xf32>
    %cst_104 = arith.constant 5.120000e+02 : f32
    %198 = vector.broadcast %cst_104 : f32 to vector<16x1xf32>
    %199 = arith.divf %197, %198 : vector<16x1xf32>
    %200 = vector.broadcast %199 : vector<16x1xf32> to vector<16x512xf32>
    %201 = arith.subf %195, %200 : vector<16x512xf32>
    %202 = arith.mulf %201, %201 : vector<16x512xf32>
    %cst_105 = arith.constant dense<0.000000e+00> : vector<16xf32>
    %203 = vector.multi_reduction <add>, %202, %cst_105 [1] : vector<16x512xf32> to vector<16xf32>
    %204 = vector.shape_cast %203 : vector<16xf32> to vector<16x1xf32>
    %cst_106 = arith.constant 5.120000e+02 : f32
    %205 = vector.broadcast %cst_106 : f32 to vector<16x1xf32>
    %206 = arith.divf %204, %205 : vector<16x1xf32>
    %cst_107 = arith.constant 9.99999974E-6 : f32
    %207 = vector.broadcast %cst_107 : f32 to vector<16x1xf32>
    %208 = arith.addf %206, %207 : vector<16x1xf32>
    %209 = math.rsqrt %208 : vector<16x1xf32>
    %210 = vector.broadcast %209 : vector<16x1xf32> to vector<16x512xf32>
    %211 = arith.mulf %201, %210 : vector<16x512xf32>
    %cst_108 = arith.constant 0.000000e+00 : f32
    %212 = vector.broadcast %cst_108 : f32 to vector<16x512xf32>
    %213 = arith.maximumf %211, %212 : vector<16x512xf32>
    %c0_109 = arith.constant 0 : index
    %c0_110 = arith.constant 0 : index
    %214 = vector.load %arg6[%c0_109, %c0_110] : memref<8x16xf32, #tpu.memory_space<vmem>>, vector<8x16xf32>
    %cst_111 = arith.constant dense<0.000000e+00> : vector<8x512xf32>
    %215 = tpu.matmul %214, %213, %cst_111 {dimension_numbers = #tpu.dot_dimension_numbers<[1], [0], [0], [1], [0, 0, 1, 1], [], []>} : vector<8x16xf32>, vector<16x512xf32>, vector<8x512xf32> -> vector<8x512xf32>
    %cst_112 = arith.constant dense<0.000000e+00> : vector<8xf32>
    %216 = vector.multi_reduction <add>, %215, %cst_112 [1] : vector<8x512xf32> to vector<8xf32>
    %217 = vector.shape_cast %216 : vector<8xf32> to vector<8x1xf32>
    %cst_113 = arith.constant 5.120000e+02 : f32
    %218 = vector.broadcast %cst_113 : f32 to vector<8x1xf32>
    %219 = arith.divf %217, %218 : vector<8x1xf32>
    %220 = vector.broadcast %219 : vector<8x1xf32> to vector<8x512xf32>
    %221 = arith.subf %215, %220 : vector<8x512xf32>
    %222 = arith.mulf %221, %221 : vector<8x512xf32>
    %cst_114 = arith.constant dense<0.000000e+00> : vector<8xf32>
    %223 = vector.multi_reduction <add>, %222, %cst_114 [1] : vector<8x512xf32> to vector<8xf32>
    %224 = vector.shape_cast %223 : vector<8xf32> to vector<8x1xf32>
    %cst_115 = arith.constant 5.120000e+02 : f32
    %225 = vector.broadcast %cst_115 : f32 to vector<8x1xf32>
    %226 = arith.divf %224, %225 : vector<8x1xf32>
    %cst_116 = arith.constant 9.99999974E-6 : f32
    %227 = vector.broadcast %cst_116 : f32 to vector<8x1xf32>
    %228 = arith.addf %226, %227 : vector<8x1xf32>
    %229 = math.rsqrt %228 : vector<8x1xf32>
    %230 = vector.broadcast %229 : vector<8x1xf32> to vector<8x512xf32>
    %231 = arith.mulf %221, %230 : vector<8x512xf32>
    %c0_117 = arith.constant 0 : index
    %c0_118 = arith.constant 0 : index
    %232 = vector.load %arg3[%c0_117, %c0_118] : memref<8x4xf32, #tpu.memory_space<vmem>>, vector<8x4xf32>
    %cst_119 = arith.constant dense<0.000000e+00> : vector<8x512xf32>
    %233 = tpu.matmul %232, %1, %cst_119 {dimension_numbers = #tpu.dot_dimension_numbers<[1], [0], [0], [1], [0, 0, 1, 1], [], []>} : vector<8x4xf32>, vector<4x512xf32>, vector<8x512xf32> -> vector<8x512xf32>
    %cst_120 = arith.constant dense<0.000000e+00> : vector<8xf32>
    %234 = vector.multi_reduction <add>, %233, %cst_120 [1] : vector<8x512xf32> to vector<8xf32>
    %235 = vector.shape_cast %234 : vector<8xf32> to vector<8x1xf32>
    %cst_121 = arith.constant 5.120000e+02 : f32
    %236 = vector.broadcast %cst_121 : f32 to vector<8x1xf32>
    %237 = arith.divf %235, %236 : vector<8x1xf32>
    %238 = vector.broadcast %237 : vector<8x1xf32> to vector<8x512xf32>
    %239 = arith.subf %233, %238 : vector<8x512xf32>
    %240 = arith.mulf %239, %239 : vector<8x512xf32>
    %cst_122 = arith.constant dense<0.000000e+00> : vector<8xf32>
    %241 = vector.multi_reduction <add>, %240, %cst_122 [1] : vector<8x512xf32> to vector<8xf32>
    %242 = vector.shape_cast %241 : vector<8xf32> to vector<8x1xf32>
    %cst_123 = arith.constant 5.120000e+02 : f32
    %243 = vector.broadcast %cst_123 : f32 to vector<8x1xf32>
    %244 = arith.divf %242, %243 : vector<8x1xf32>
    %cst_124 = arith.constant 9.99999974E-6 : f32
    %245 = vector.broadcast %cst_124 : f32 to vector<8x1xf32>
    %246 = arith.addf %244, %245 : vector<8x1xf32>
    %247 = math.rsqrt %246 : vector<8x1xf32>
    %248 = vector.broadcast %247 : vector<8x1xf32> to vector<8x512xf32>
    %249 = arith.mulf %239, %248 : vector<8x512xf32>
    %250 = arith.addf %231, %249 : vector<8x512xf32>
    %cst_125 = arith.constant 0.000000e+00 : f32
    %251 = vector.broadcast %cst_125 : f32 to vector<8x512xf32>
    %252 = arith.maximumf %250, %251 : vector<8x512xf32>
    %c0_126 = arith.constant 0 : index
    %c0_127 = arith.constant 0 : index
    %c0_128 = arith.constant 0 : index
    %253 = vector.load %arg7[%c0_126, %c0_127, %c0_128] : memref<1x8x512xf32, #tpu.memory_space<vmem>>, vector<1x8x512xf32>
    %254 = vector.shape_cast %253 : vector<1x8x512xf32> to vector<8x512xf32>
    %255 = vector.shape_cast %252 : vector<8x512xf32> to vector<1x8x512xf32>
    tpu.vector_store %arg7[%c0_126, %c0_127, %c0_128], %255 {strides = array<i32>} : memref<1x8x512xf32, #tpu.memory_space<vmem>>, vector<1x8x512xf32>,
    return
  }
  func.func @transform_0(%arg0: i32) -> (i32, i32) {
    %c0_i32 = arith.constant 0 : i32
    %c0_i32_0 = arith.constant 0 : i32
    %c0_i32_1 = arith.constant 0 : i32
    return %c0_i32, %c0_i32_0 : i32, i32
  }
  func.func @transform_1(%arg0: i32) -> (i32, i32, i32) {
    %c0_i32 = arith.constant 0 : i32
    %c0_i32_0 = arith.constant 0 : i32
    %c0_i32_1 = arith.constant 0 : i32
    return %arg0, %c0_i32, %c0_i32_0 : i32, i32, i32
  }
  func.func @transform_2(%arg0: i32) -> (i32, i32) {
    %c0_i32 = arith.constant 0 : i32
    %c0_i32_0 = arith.constant 0 : i32
    %c0_i32_1 = arith.constant 0 : i32
    return %c0_i32, %c0_i32_0 : i32, i32
  }
  func.func @transform_3(%arg0: i32) -> (i32, i32) {
    %c0_i32 = arith.constant 0 : i32
    %c0_i32_0 = arith.constant 0 : i32
    %c0_i32_1 = arith.constant 0 : i32
    return %c0_i32, %c0_i32_0 : i32, i32
  }
  func.func @transform_4(%arg0: i32) -> (i32, i32, i32) {
    %c0_i32 = arith.constant 0 : i32
    %c0_i32_0 = arith.constant 0 : i32
    %c0_i32_1 = arith.constant 0 : i32
    %c0_i32_2 = arith.constant 0 : i32
    return %c0_i32, %c0_i32_0, %c0_i32_1 : i32, i32, i32
  }
  func.func @transform_5(%arg0: i32) -> (i32, i32) {
    %c0_i32 = arith.constant 0 : i32
    %c0_i32_0 = arith.constant 0 : i32
    %c0_i32_1 = arith.constant 0 : i32
    return %c0_i32, %c0_i32_0 : i32, i32
  }
  func.func @transform_6(%arg0: i32) -> (i32, i32, i32) {
    %c0_i32 = arith.constant 0 : i32
    %c0_i32_0 = arith.constant 0 : i32
    %c0_i32_1 = arith.constant 0 : i32
    return %arg0, %c0_i32, %c0_i32_0 : i32, i32, i32
  }
}

</mosaic_0001>

<bundles_post_ra>
// kernel: tpu_custom_call.1
= control target key start
LH: loop header
LB: loop body
LE: loop exit
PB: predicated region body
PF: predicated region fallthrough
CT: control target
= control target key end

     0   :  { %11 = vsyncpa [#allocation4], 0  ;;  %s4450_s0 = inlined_call_operand.hbm [shape: f32[27,512], index: 0, kind: input, shape index: {}]   ;;  %s4451_s1 = inlined_call_operand.vmem [shape: f32[2,4,512], index: 1, kind: input, shape index: {}]   ;;  %s4452_s2 = inlined_call_operand.vmem [shape: f32[8,4], index: 2, kind: input, shape index: {}]   ;;  %s4453_s3 = inlined_call_operand.vmem [shape: f32[16,4], index: 3, kind: input, shape index: {}]   ;;  %s4454_s4 = inlined_call_operand.hbm [shape: bf16[3,16,144], index: 4, kind: input, shape index: {}]   ;;  %s4455_s5 = inlined_call_operand.vmem [shape: f32[8,16], index: 5, kind: input, shape index: {}]   ;;  %s4456_s6 = inlined_call_operand.hbm [shape: f32[2,8,512], index: 6, kind: output, shape index: {}]  }
   0x1   :  { %12 = vsyncpa [#allocation7], 0 }
   0x2   :  { %13 = vsyncpa [#allocation5], 0 }
   0x3   :  { %15 = vsyncpa [#allocation5 + $0x1], 0  ;;  %s3264_s21 = smov 0   ;;  %s3266_s22 = smov 0  }
   0x4   :  { %s3268_s23 = smov 0   ;;  %s3270_s24 = smov 0  }
   0x5 LB: > { %s3285_s25 = sadd.s32 4294967295, %s3202_s24   ;;  %s2899_s26 = sadd.s32 4294967294, %s3202_s24   ;;  %s3202_s24 = sphi %s3270_s24, %s4595_s24   ;;  %s3198_s23 = sphi %s3268_s23, %s4594_s23   ;;  %s3194_s22 = sphi %s3266_s22, %s4593_s22   ;;  %s3190_s21 = sphi %s3264_s21, %s4592_s21  }
   0x6   : > { %s3289_s27 = sadd.s32 1, %s3202_s24   ;;  %s159_s28 = sadd.s32 1, %s3198_s23 }
   0x7   : > { %s156_s29 = ssub.s32 %s3202_s24, %s3289_s27  ;;  %p169_p0 = scmp.ne.s32.totalorder %s3198_s23, %s3194_s22 }
   0x8   : > { %p157_p1 = scmp.eq.s32.totalorder %s156_s29, 0  ;;  %p170_p2 = scmp.eq.s32.totalorder %s3285_s25, 1 }
   0x9   : > { %p175_p3 = scmp.ne.s32.totalorder %s3194_s22, %s3190_s21  ;;  %p176_p4 = scmp.eq.s32.totalorder %s2899_s26, 1 }
   0xa   : > { %s3300_s30 = scalar_select %p157_p1, %s3198_s23, %s159_s28  }
   0xb   : > { %p3302_p5 = por %p170_p2, %p169_p0  ;;  %p3306_p6 = por %p176_p4, %p175_p3 }
   0xc   : > { %p2900_p7 = scmp.ge.s32.totalorder %s3202_s24, 1  ;;  %p183_p8 = scmp.lt.s32.totalorder %s3202_s24, 3 }
   0xd   : > { %s4493_s7 = scalar_select %p3302_p5, 1, 0 }
   0xe   : > { %s4494_s8 = scalar_select %p3306_p6, 1, 0 }
   0xf   : > { %p4457_p9 = scmp.eq.s32.totalorder %s3285_s25, 0  ;;  %p3313_p10 = pnand %p2900_p7, %p183_p8 }
  0x10   : > { %s3204_s10 = smov [#allocation3]   ;;  %s3205_s13 = smov [#allocation6]  }
  0x11   : > { %s4495_s9 = scalar_select %p3313_p10, 1, 0 }
  0x12   : > { %s195_s11 = sshll.u32 %s3204_s10, 4  ;;  %p2979_p11 = pneg %p3313_p10  ;;  %s196_s11 = int_to_ptr.vmem [resolvable:$true] %s195_s11 }
  0x13   : > { %s214_s14 = sshll.u32 %s3205_s13, 4  ;;  %s3076_s17 = scalar_lea.hbm %s4450_s0, 2048  ;;  %s3325_s14 = int_to_ptr.vmem [resolvable:$true] %s214_s14 }
  0x14   : > { %p3321_p12 = pnand %p4457_p9, %p2979_p11  ;;  %p3077_p13 = scmp.ne.s32.totalorder %s4450_s0, %s3076_s17 }
  0x15   : > { %p3083_p3 = scmp.lt.u32.totalorder %s3076_s17, %s4450_s0 }
  0x16   : > { %p3078_p0 = pneg %p3321_p12 }
  0x18   : > { %p3079_p1 = pnand %p3078_p0, %p3077_p13 }
  0x1a   : > { %p3080_p2 = pneg %p3079_p1 }
  0x1c   : > { %p3085_p4 = pnand %p3083_p3, %p3080_p2 }
  0x1e   : > { %3088 = shalt.err (!%p3085_p4)
}
  0x1f   : > { %s3089_s28 = scalar_lea.vmem %s196_s11, 2048  ;;  %p3097_p9 = scmp.lt.s32.totalorder %s196_s11, %s196_s11 }
  0x20   : > { %p3090_p7 = scmp.ne.s32.totalorder %s196_s11, %s3089_s28  ;;  %p3098_p6 = scmp.lt.s32.totalorder %s3089_s28, %s3089_s28 }
  0x22   : > { %p3092_p8 = pnand %p3090_p7, %p3078_p0  ;;  %p3099_p5 = por %p3098_p6, %p3097_p9 }
  0x24   : > { %p3093_p11 = pneg %p3092_p8 }
  0x26   : > { %p3100_p10 = pnand %p3099_p5, %p3093_p11 }
  0x28   : > { %3103 = shalt.err (!%p3100_p10)
}
  0x29   : > { %s3206_s29 = smov 512   ;;  %s3207_s10 = smov 32  }
  0x2a   : > { %2982 = dma.hbm_to_vmem [thread:$0]  (!%p3321_p12), %s4450_s0, 2048, %s196_s11, [#allocation4], %s3206_s29, %s3206_s29, %s3207_s10  }
  0x2b   : > { %s3104_s18 = scalar_lea.hbm %s4454_s4, 768 }
  0x2c   : > { %p3105_p13 = scmp.ne.s32.totalorder %s4454_s4, %s3104_s18  ;;  %p3111_p9 = scmp.lt.u32.totalorder %s3104_s18, %s4454_s4 }
  0x2e   : > { %p3107_p5 = pnand %p3105_p13, %p3078_p0 }
  0x30   : > { %p3108_p6 = pneg %p3107_p5 }
  0x32   : > { %p3113_p10 = pnand %p3111_p9, %p3108_p6 }
  0x34   : > { %3116 = shalt.err (!%p3113_p10)
}
  0x35   : > { %s3117_s11 = scalar_lea.vmem %s3325_s14, 768  ;;  %p3125_p4 = scmp.lt.s32.totalorder %s3325_s14, %s3325_s14 }
  0x36   : > { %p3118_p1 = scmp.ne.s32.totalorder %s3325_s14, %s3117_s11  ;;  %p3126_p7 = scmp.lt.s32.totalorder %s3117_s11, %s3117_s11 }
  0x38   : > { %p3120_p2 = pnand %p3118_p1, %p3078_p0  ;;  %p3127_p8 = por %p3126_p7, %p3125_p4 }
  0x3a   : > { %p3121_p3 = pneg %p3120_p2 }
  0x3c   : > { %p3128_p11 = pnand %p3127_p8, %p3121_p3 }
  0x3e   : > { %3131 = shalt.err (!%p3128_p11)
}
  0x3f   : > { %s3208_s29 = smov 128   ;;  %s3209_s10 = smov 8  }
  0x40   : > { %2985 = dma.hbm_to_vmem [thread:$0]  (!%p3321_p12), %s4454_s4, 768, %s3325_s14, [#allocation7], %s3208_s29, %s3208_s29, %s3209_s10  }
  0x41   : > { %p4497_p13 = scmp.ne.s32.totalorder %s4495_s9, 0 }
  0x43   : > { %241 = sbr.rel (%p4497_p13) target bundleno = 2155 (0x86b), region = 44 }
  0x4a   : > { %p4498_p0 = scmp.eq.s32.totalorder %s3285_s25, 0 }
  0x4c   : > { %3177 = dma.done.wait (%p4498_p0), [#allocation4], 2048   ;;  %p4499_p5 = pmov %p4498_p0 }
  0x4d   : > { %p4500_p6 = pmov %p4498_p0 }
  0x4e   : > { %3179 = vsyncadd (%p4499_p5), [#allocation4], 4294965248 }
  0x4f   : > { %3181 = dma.done.wait (%p4500_p6), [#allocation7], 768   ;;  %p4501_p9 = pmov %p4498_p0 }
  0x50   : > { %p275_p10 = scmp.lt.s32.totalorder %s3285_s25, 1  ;;  %v4460_v0 = vmov 0.0   ;;  %vm296_vm0 = vcmask 1043456   ;;  %v283_v4 = vld [vmem:[%s4453_s3] sm:$0xff]  ;;  %vm289_vm1 = vcmask 31744   ;;  %v284_v6 = vld [vmem:[%s4453_s3 + $0x8] sm:$0xff] }
  0x51   : > { %3183 = vsyncadd (%p4501_p9), [#allocation7], 4294966528  ;;  %369 = vmatprep.mubr.f32.mxu0 %v4460_v0  ;;  %446 = vmatprep.mubr.f32.mxu1 %v4460_v0  ;;  %s3211_s28 = smov 9   ;;  %s3212_s11 = smov 8   ;;  %vm1703_vm3 = vcmask 130048  }
  0x52   : > { %s276_s9 = scalar_select %p275_p10, %s3285_s25, 1 }
  0x53   : > { %s3213_s29 = smov 7   ;;  %s3214_s10 = smov 1  }
  0x54   : > { %s2943_s12 = sshll.u32 %s276_s9, 4  ;;  %s3215_s13 = smov 127  }
  0x55   : > { %s3391_s17 = scalar_lea.vmem %s4451_s1, %s2943_s12  ;;  %s3216_s15 = smov 121  }
  0x56   : > { %v281_v1 = vld [vmem:[%s3391_s17] sm:$0xff]  ;;  %v282_v2 = vld [vmem:[%s3391_s17 + $0x8] sm:$0xff]  ;;  %s3217_s9 = smov 120   ;;  %s3218_s12 = smov 119  }
  0x57   : > { %v3395_v3 = vcombine.high %v281_v1, %v281_v1  ;;  %v3400_v5 = vcombine.high %v282_v2, %v282_v2  ;;  %s3219_s14 = smov 73   ;;  %s3220_s16 = smov 72  }
  0x58   : > { %s3221_s18 = smov 71   ;;  %s3222_s19 = smov 65  }
  0x59   : > { %4502 = vst [vmem:[#allocation12_spill] sm:$0xff] %v3395_v3  ;;  %4503 = vst [vmem:[#allocation13_spill] sm:$0xff] %v3400_v5  ;;  %2910 = vmatprep.subr.msk.mxu0 %vm296_vm0, %v3395_v3  ;;  %2914 = vmatprep.subr.msk.mxu1 %vm296_vm0, %v3400_v5  ;;  %s3223_s20 = smov 64   ;;  %s3224_s26 = smov 63  }
  0x5a   : > { %2911 = vmatpush1.msk.msra.mxu0 %vm296_vm0, %v281_v1  ;;  %2915 = vmatpush1.msk.msra.mxu1 %vm296_vm0, %v282_v2  ;;  %p4590_p1 = scmp.ne.s32.totalorder %s4493_s7, 0 }
  0x5b   : > { %2912 = vmatmul.mubr.msk.f32.vlgmr.msra.gmra.mrb[0].mxu0 %vm289_vm1, %v283_v4  ;;  %2916 = vmatmul.mubr.msk.f32.vlgmr.msra.gmra.mrb[0].mxu1 %vm289_vm1, %v283_v4 }
  0x5c   : > { %375 = vmatprep.mubr.f32.mxu0 %v4460_v0  ;;  %452 = vmatprep.mubr.f32.mxu1 %v4460_v0 }
  0x5f   : > { %2913 = vmatmul.mubr.msk.f32.gmra.mrb[2].mxu0 %vm289_vm1, %v284_v6  ;;  %2917 = vmatmul.mubr.msk.f32.gmra.mrb[2].mxu1 %vm289_vm1, %v284_v6 }
 0x12e   : > { %v371_v7 = vpop.f32.mrb[0].mxu0  ;;  %v448_v8 = vpop.f32.mrb[0].mxu1 }
 0x12f   : > { %v373_v9 = vpop.f32.mrb[1].mxu0  ;;  %v450_v10 = vpop.f32.mrb[1].mxu1 }
 0x130   : > { %v459_v11 = vadd.f32 %v373_v9, %v371_v7 }
 0x132   : > { %v460_v12 = vadd.f32 %v459_v11, %v448_v8  ;;  %v377_v13 = vpop.f32.mrb[2].mxu0  ;;  %v454_v14 = vpop.f32.mrb[2].mxu1 }
 0x133   : > { %v379_v15 = vpop.f32.mrb[3].mxu0  ;;  %v456_v16 = vpop.f32.mrb[3].mxu1 }
 0x134   : > { %v464_v17 = vadd.f32 %v379_v15, %v377_v13  ;;  %v461_v18 = vadd.f32 %v460_v12, %v450_v10 }
 0x136   : > { %v465_v19 = vadd.f32 %v464_v17, %v454_v14  ;;  %462 = vadd.xlane.f32.xlu0 %v461_v18 }
 0x138   : > { %v466_v20 = vadd.f32 %v465_v19, %v456_v16 }
 0x13a   : > { %467 = vadd.xlane.f32.xlu0 %v466_v20 }
 0x1c3   : > { %v463_v21 = vpop.xlane.xlu0 %462 }
 0x1c4   : > { %v470_v22 = vmul.f32 0.001953125, %v463_v21 }
 0x1c6   : > { %v472_v23 = vsub.f32 %v371_v7, %v470_v22  ;;  %v473_v24 = vsub.f32 %v373_v9, %v470_v22  ;;  %v474_v25 = vsub.f32 %v448_v8, %v470_v22  ;;  %v475_v27 = vsub.f32 %v450_v10, %v470_v22 }
 0x1c7   : > { %v468_v26 = vpop.xlane.xlu0 %467  ;;  %v536_v10 = vlaneseq }
 0x1c8   : > { %v471_v28 = vmul.f32 0.001953125, %v468_v26  ;;  %v480_v29 = vmul.f32 %v472_v23, %v472_v23  ;;  %v481_v30 = vmul.f32 %v473_v24, %v473_v24  ;;  %v482_v31 = vmul.f32 %v474_v25, %v474_v25 }
 0x1c9   : > { %v483_v36 = vmul.f32 %v475_v27, %v475_v27  ;;  %v550_v11 = vshrl.u32 %v536_v10, 7 }
 0x1ca   : > { %v488_v32 = vadd.f32 %v481_v30, %v480_v29  ;;  %v476_v33 = vsub.f32 %v377_v13, %v471_v28  ;;  %v477_v34 = vsub.f32 %v379_v15, %v471_v28  ;;  %v478_v35 = vsub.f32 %v454_v14, %v471_v28 }
 0x1cb   : > { %v479_v38 = vsub.f32 %v456_v16, %v471_v28  ;;  %v3493_v14 = vand.u32 127, %v536_v10  ;;  %v3497_v15 = vsub.s32 1, %v550_v11  ;;  %v1161_v16 = vld [vmem:[#allocation3 + $0x21] ss:$8 sm:$0xf]  ;;  %v3505_v20 = vsub.s32 0, %v550_v11 }
 0x1cc   : > { %v489_v37 = vadd.f32 %v488_v32, %v482_v31  ;;  %v484_v39 = vmul.f32 %v476_v33, %v476_v33  ;;  %v485_v40 = vmul.f32 %v477_v34, %v477_v34  ;;  %v486_v42 = vmul.f32 %v478_v35, %v478_v35 }
 0x1cd   : > { %v487_v44 = vmul.f32 %v479_v38, %v479_v38  ;;  %vm1151_vm2 = vcmp.lt.s32.totalorder %v3493_v14, 9  ;;  %v1170_v19 = vrot.slane %v1161_v16, %v3497_v15  ;;  %v3515_v26 = vsub.s32 3, %v550_v11 }
 0x1ce   : > { %v490_v41 = vadd.f32 %v489_v37, %v483_v36  ;;  %v493_v43 = vadd.f32 %v485_v40, %v484_v39  ;;  %v1166_v28 = vrot.slane %v1161_v16, %v3505_v20  ;;  %vm1215_vm4 = vcmp.lt.s32.totalorder %v3493_v14, 8 }
 0x1cf   : > { %vm1279_vm5 = vcmp.lt.s32.totalorder %v3493_v14, 7  ;;  %vm1343_vm6 = vcmp.lt.s32.totalorder %v3493_v14, 1  ;;  %vm1415_vm7 = vcmp.lt.s32.totalorder %v3493_v14, 127  ;;  %vm1479_vm8 = vcmp.lt.s32.totalorder %v3493_v14, 121 }
 0x1d0   : > { %491 = vadd.xlane.f32.xlu1 %v490_v41  ;;  %v494_v45 = vadd.f32 %v493_v43, %v486_v42  ;;  %vm1543_vm9 = vcmp.lt.s32.totalorder %v3493_v14, 120  ;;  %vm1607_vm10 = vcmp.lt.s32.totalorder %v3493_v14, 119  ;;  %vm538_vm11 = vcmp.lt.s32.totalorder %v3493_v14, 73 }
 0x1d1   : > { %vm601_vm12 = vcmp.lt.s32.totalorder %v3493_v14, 72  ;;  %vm665_vm13 = vcmp.lt.s32.totalorder %v3493_v14, 71  ;;  %vm729_vm14 = vcmp.lt.s32.totalorder %v3493_v14, 65  ;;  %vm793_vm15 = vcmp.lt.s32.totalorder %v3493_v14, 64 }
 0x1d2   : > { %v495_v46 = vadd.f32 %v494_v45, %v487_v44 }
 0x1d4   : > { %496 = vadd.xlane.f32.xlu1 %v495_v46 }
 0x25d   : > { %v492_v47 = vpop.xlane.xlu1 %491 }
 0x25e   : > { %v498_v48 = vmul.f32 0.001953125, %v492_v47  ;;  %v3055_v47 = vld [vmem:[#allocation6 + $0x14] ss:$8 sps:$4 sm:$0xff]  }
 0x25f   : > { %2920 = vmatprep.mubr.msk.bf16.mxu0 %vm1703_vm3, %v3055_v47  ;;  %2921 = vmatprep.mubr.msk.bf16.mxu1 %vm1703_vm3, %v3055_v47 }
 0x260   : > { %v500_v49 = vadd.f32 1e-05, %v498_v48 }
 0x261   : > { %v497_v50 = vpop.xlane.xlu1 %496 }
 0x262   : > { %3062 = vrsqrt.f32 %v500_v49  ;;  %v499_v51 = vmul.f32 0.001953125, %v497_v50 }
 0x264   : > { %v501_v52 = vadd.f32 1e-05, %v499_v51  ;;  %v1225_v51 = vld [vmem:[#allocation3 + $0x22] ss:$8 sm:$0xf] }
 0x266   : > { %3064 = vrsqrt.f32 %v501_v52 }
 0x26c   : > { %v3063_v53 = vpop.eup %3062 }
 0x26d   : > { %v504_v54 = vmul.f32 %v3063_v53, %v472_v23  ;;  %v505_v55 = vmul.f32 %v3063_v53, %v473_v24  ;;  %v507_v56 = vmul.f32 %v3063_v53, %v475_v27  ;;  %v506_v61 = vmul.f32 %v3063_v53, %v474_v25 }
 0x26e   : > { %v3513_v25 = vsub.s32 2, %v550_v11 }
 0x26f   : > { %v3417_v57 = vmax.f32 %v504_v54, 0.0  ;;  %v3419_v58 = vmax.f32 %v505_v55, 0.0  ;;  %v3423_v62 = vmax.f32 %v507_v56, 0.0  ;;  %v3429_v2 = vmax.f32 %v506_v61, 0.0 }
 0x270   : > { %v3065_v59 = vpop.eup %3064  ;;  %v1234_v56 = vrot.slane %v1225_v51, %v3497_v15 }
 0x271   : > { %v508_v60 = vmul.f32 %v3065_v59, %v476_v33  ;;  %1135 = vrot.lane.b32.xlu0 %v3417_v57, %s3211_s28  ;;  %1139 = vrot.lane.b32.xlu1 %v3419_v58, %s3211_s28  ;;  %v509_v1 = vmul.f32 %v3065_v59, %v477_v34  ;;  %v511_v4 = vmul.f32 %v3065_v59, %v479_v38 }
 0x272   : > { %v510_v7 = vmul.f32 %v3065_v59, %v478_v35  ;;  %v1174_v34 = vrot.slane %v1161_v16, %v3513_v25  ;;  %v1178_v35 = vrot.slane %v1161_v16, %v3515_v26 }
 0x273   : > { %v3425_v63 = vmax.f32 %v508_v60, 0.0  ;;  %v3431_v6 = vmax.f32 %v509_v1, 0.0  ;;  %v3435_v8 = vmax.f32 %v511_v4, 0.0 }
 0x274   : > { %v3439_v9 = vmax.f32 %v510_v7, 0.0  ;;  %v1230_v7 = vrot.slane %v1225_v51, %v3505_v20 }
 0x275   : > { %1147 = vrot.lane.b32.xlu0 %v3423_v62, %s3211_s28  ;;  %1137 = vrot.lane.b32.xlu1 %v3425_v63, %s3211_s28 }
 0x279   : > { %1143 = vrot.lane.b32.xlu0 %v3429_v2, %s3211_s28  ;;  %1141 = vrot.lane.b32.xlu1 %v3431_v6, %s3211_s28 }
 0x27d   : > { %1199 = vrot.lane.b32.xlu0 %v3417_v57, %s3212_s11  ;;  %1149 = vrot.lane.b32.xlu1 %v3435_v8, %s3211_s28 }
 0x281   : > { %1203 = vrot.lane.b32.xlu0 %v3419_v58, %s3212_s11  ;;  %1145 = vrot.lane.b32.xlu1 %v3439_v9, %s3211_s28  ;;  %s3225_s28 = smov 57  }
 0x285   : > { %1211 = vrot.lane.b32.xlu0 %v3423_v62, %s3212_s11  ;;  %1201 = vrot.lane.b32.xlu1 %v3425_v63, %s3212_s11 }
 0x289   : > { %1207 = vrot.lane.b32.xlu0 %v3429_v2, %s3212_s11  ;;  %1205 = vrot.lane.b32.xlu1 %v3431_v6, %s3212_s11 }
 0x28d   : > { %1263 = vrot.lane.b32.xlu0 %v3417_v57, %s3213_s29  ;;  %1213 = vrot.lane.b32.xlu1 %v3435_v8, %s3212_s11 }
 0x291   : > { %1267 = vrot.lane.b32.xlu0 %v3419_v58, %s3213_s29  ;;  %1209 = vrot.lane.b32.xlu1 %v3439_v9, %s3212_s11  ;;  %s3226_s11 = smov 56  }
 0x295   : > { %1275 = vrot.lane.b32.xlu0 %v3423_v62, %s3213_s29  ;;  %1265 = vrot.lane.b32.xlu1 %v3425_v63, %s3213_s29 }
 0x299   : > { %1271 = vrot.lane.b32.xlu0 %v3429_v2, %s3213_s29  ;;  %1269 = vrot.lane.b32.xlu1 %v3431_v6, %s3213_s29 }
 0x29d   : > { %1327 = vrot.lane.b32.xlu0 %v3417_v57, %s3214_s10  ;;  %1277 = vrot.lane.b32.xlu1 %v3435_v8, %s3213_s29 }
 0x2a1   : > { %1331 = vrot.lane.b32.xlu0 %v3419_v58, %s3214_s10  ;;  %1273 = vrot.lane.b32.xlu1 %v3439_v9, %s3213_s29  ;;  %s3227_s29 = smov 55  }
 0x2a5   : > { %1339 = vrot.lane.b32.xlu0 %v3423_v62, %s3214_s10  ;;  %1329 = vrot.lane.b32.xlu1 %v3425_v63, %s3214_s10 }
 0x2a9   : > { %1335 = vrot.lane.b32.xlu0 %v3429_v2, %s3214_s10  ;;  %1333 = vrot.lane.b32.xlu1 %v3431_v6, %s3214_s10 }
 0x2ad   : > { %1403 = vrot.lane.b32.xlu0 %v3419_v58, %s3215_s13  ;;  %1341 = vrot.lane.b32.xlu1 %v3435_v8, %s3214_s10 }
 0x2b1   : > { %1407 = vrot.lane.b32.xlu0 %v3429_v2, %s3215_s13  ;;  %1337 = vrot.lane.b32.xlu1 %v3439_v9, %s3214_s10 }
 0x2b5   : > { %1399 = vrot.lane.b32.xlu0 %v3417_v57, %s3215_s13  ;;  %1405 = vrot.lane.b32.xlu1 %v3431_v6, %s3215_s13 }
 0x2b9   : > { %1411 = vrot.lane.b32.xlu0 %v3423_v62, %s3215_s13  ;;  %1409 = vrot.lane.b32.xlu1 %v3439_v9, %s3215_s13 }
 0x2bd   : > { %1467 = vrot.lane.b32.xlu0 %v3419_v58, %s3216_s15  ;;  %1401 = vrot.lane.b32.xlu1 %v3425_v63, %s3215_s13 }
 0x2c1   : > { %1471 = vrot.lane.b32.xlu0 %v3429_v2, %s3216_s15  ;;  %1413 = vrot.lane.b32.xlu1 %v3435_v8, %s3215_s13 }
 0x2c5   : > { %1463 = vrot.lane.b32.xlu0 %v3417_v57, %s3216_s15  ;;  %1469 = vrot.lane.b32.xlu1 %v3431_v6, %s3216_s15 }
 0x2c9   : > { %1475 = vrot.lane.b32.xlu0 %v3423_v62, %s3216_s15  ;;  %1473 = vrot.lane.b32.xlu1 %v3439_v9, %s3216_s15 }
 0x2cd   : > { %1531 = vrot.lane.b32.xlu0 %v3419_v58, %s3217_s9  ;;  %1465 = vrot.lane.b32.xlu1 %v3425_v63, %s3216_s15 }
 0x2d1   : > { %1535 = vrot.lane.b32.xlu0 %v3429_v2, %s3217_s9  ;;  %1477 = vrot.lane.b32.xlu1 %v3435_v8, %s3216_s15 }
 0x2d5   : > { %1527 = vrot.lane.b32.xlu0 %v3417_v57, %s3217_s9  ;;  %1533 = vrot.lane.b32.xlu1 %v3431_v6, %s3217_s9 }
 0x2d9   : > { %1539 = vrot.lane.b32.xlu0 %v3423_v62, %s3217_s9  ;;  %1537 = vrot.lane.b32.xlu1 %v3439_v9, %s3217_s9 }
 0x2dd   : > { %1595 = vrot.lane.b32.xlu0 %v3419_v58, %s3218_s12  ;;  %1529 = vrot.lane.b32.xlu1 %v3425_v63, %s3217_s9 }
 0x2e1   : > { %1599 = vrot.lane.b32.xlu0 %v3429_v2, %s3218_s12  ;;  %1541 = vrot.lane.b32.xlu1 %v3435_v8, %s3217_s9 }
 0x2e3   : > { %v1136_v12 = vpop.permute.xlu0 %1135  ;;  %v1140_v13 = vpop.permute.xlu1 %1139 }
 0x2e4   : > { %v1156_v21 = vsel %vm1151_vm2, %v1136_v12, %v1140_v13 }
 0x2e5   : > { %1591 = vrot.lane.b32.xlu0 %v3417_v57, %s3218_s12  ;;  %1597 = vrot.lane.b32.xlu1 %v3431_v6, %s3218_s12  ;;  %v1184_v27 = vmul.f32 %v1170_v19, %v1156_v21 }
 0x2e7   : > { %v1148_v17 = vpop.permute.xlu0 %1147  ;;  %v1138_v18 = vpop.permute.xlu1 %1137 }
 0x2e8   : > { %v1158_v30 = vsel %vm1151_vm2, %v1148_v17, %v1136_v12 }
 0x2e9   : > { %1603 = vrot.lane.b32.xlu0 %v3423_v62, %s3218_s12  ;;  %1601 = vrot.lane.b32.xlu1 %v3439_v9, %s3218_s12  ;;  %v1183_v37 = vmul.f32 %v1166_v28, %v1158_v30 }
 0x2eb   : > { %v1144_v22 = vpop.permute.xlu0 %1143  ;;  %v1142_v23 = vpop.permute.xlu1 %1141 }
 0x2ec   : > { %v1157_v24 = vsel %vm1151_vm2, %v1138_v18, %v1142_v23  ;;  %v1154_v38 = vsel %vm1151_vm2, %v1140_v13, %v1144_v22  ;;  %v1152_v40 = vsel %vm1151_vm2, %v1144_v22, %v1148_v17  ;;  %v1238_v17 = vrot.slane %v1225_v51, %v3513_v25 }
 0x2ed   : > { %520 = vrot.lane.b32.xlu0 %v3417_v57, %s3219_s14  ;;  %v1188_v29 = vmul.f32 %v1170_v19, %v1157_v24  ;;  %1593 = vrot.lane.b32.xlu1 %v3425_v63, %s3218_s12  ;;  %v1185_v44 = vmul.f32 %v1174_v34, %v1154_v38  ;;  %v1186_v48 = vmul.f32 %v1178_v35, %v1152_v40 }
 0x2ef   : > { %v1200_v31 = vpop.permute.xlu0 %1199  ;;  %v1150_v32 = vpop.permute.xlu1 %1149  ;;  %v1192_v33 = vpack.c.bf16 %v1188_v29, %v1184_v27 }
 0x2f0   : > { %v1159_v36 = vsel %vm1151_vm2, %v1150_v32, %v1138_v18  ;;  %v1242_v18 = vrot.slane %v1225_v51, %v3515_v26 }
 0x2f1   : > { %524 = vrot.lane.b32.xlu0 %v3419_v58, %s3219_s14  ;;  %v1187_v39 = vmul.f32 %v1166_v28, %v1159_v36  ;;  %1605 = vrot.lane.b32.xlu1 %v3435_v8, %s3218_s12  ;;  %v1289_v36 = vld [vmem:[#allocation3 + $0x23] ss:$8 sm:$0xf] }
 0x2f2   : > { %1707 = vmatprep.subr.bf16.mxu0 %v1192_v33  ;;  %v1294_v47 = vrot.slane %v1289_v36, %v3505_v20 }
 0x2f3   : > { %v1204_v41 = vpop.permute.xlu0 %1203  ;;  %v1191_v42 = vpack.c.bf16 %v1187_v39, %v1183_v37  ;;  %v1146_v43 = vpop.permute.xlu1 %1145 }
 0x2f4   : > { %v1153_v45 = vsel %vm1151_vm2, %v1146_v43, %v1150_v32  ;;  %v1155_v46 = vsel %vm1151_vm2, %v1142_v23, %v1146_v43  ;;  %v1220_v59 = vsel %vm1215_vm4, %v1200_v31, %v1204_v41  ;;  %vm857_vm2 = vcmp.lt.s32.totalorder %v3493_v14, 63 }
 0x2f5   : > { %532 = vrot.lane.b32.xlu0 %v3423_v62, %s3219_s14  ;;  %v1189_v49 = vmul.f32 %v1174_v34, %v1155_v46  ;;  %v1190_v50 = vmul.f32 %v1178_v35, %v1153_v45  ;;  %522 = vrot.lane.b32.xlu1 %v3425_v63, %s3219_s14  ;;  %v1248_v4 = vmul.f32 %v1234_v56, %v1220_v59 }
 0x2f6   : > { %1708 = vmatpush1.bf16.msra.mxu0 %v1191_v42 }
 0x2f7   : > { %v1212_v52 = vpop.permute.xlu0 %1211  ;;  %v1193_v53 = vpack.c.bf16 %v1189_v49, %v1185_v44  ;;  %v1202_v54 = vpop.permute.xlu1 %1201  ;;  %v1194_v55 = vpack.c.bf16 %v1190_v50, %v1186_v48 }
 0x2f8   : > { %v1222_v11 = vsel %vm1215_vm4, %v1212_v52, %v1200_v31 }
 0x2f9   : > { %528 = vrot.lane.b32.xlu0 %v3429_v2, %s3219_s14  ;;  %526 = vrot.lane.b32.xlu1 %v3431_v6, %s3219_s14  ;;  %v1247_v21 = vmul.f32 %v1230_v7, %v1222_v11 }
 0x2fa   : > { %1750 = vmatprep.subr.bf16.mxu1 %v1194_v55 }
 0x2fb   : > { %1751 = vmatpush1.bf16.msra.mxu1 %v1193_v53  ;;  %v1208_v60 = vpop.permute.xlu0 %1207  ;;  %v1206_v61 = vpop.permute.xlu1 %1205  ;;  %v1302_v53 = vrot.slane %v1289_v36, %v3513_v25 }
 0x2fc   : > { %v1221_v1 = vsel %vm1215_vm4, %v1202_v54, %v1206_v61  ;;  %v1218_v22 = vsel %vm1215_vm4, %v1204_v41, %v1208_v60  ;;  %v1216_v24 = vsel %vm1215_vm4, %v1208_v60, %v1212_v52  ;;  %v1298_v41 = vrot.slane %v1289_v36, %v3497_v15 }
 0x2fd   : > { %585 = vrot.lane.b32.xlu0 %v3417_v57, %s3220_s16  ;;  %v1252_v10 = vmul.f32 %v1234_v56, %v1221_v1  ;;  %534 = vrot.lane.b32.xlu1 %v3435_v8, %s3219_s14  ;;  %v1249_v30 = vmul.f32 %v1238_v17, %v1218_v22  ;;  %v1250_v33 = vmul.f32 %v1242_v18, %v1216_v24 }
 0x2ff   : > { %v1264_v12 = vpop.permute.xlu0 %1263  ;;  %v1214_v13 = vpop.permute.xlu1 %1213  ;;  %v1256_v16 = vpack.c.bf16 %v1252_v10, %v1248_v4 }
 0x300   : > { %v1223_v19 = vsel %vm1215_vm4, %v1214_v13, %v1202_v54  ;;  %v1306_v54 = vrot.slane %v1289_v36, %v3515_v26 }
 0x301   : > { %589 = vrot.lane.b32.xlu0 %v3419_v58, %s3220_s16  ;;  %v1251_v23 = vmul.f32 %v1230_v7, %v1223_v19  ;;  %530 = vrot.lane.b32.xlu1 %v3439_v9, %s3219_s14  ;;  %s2944_s14 = sshll.u32 %s3285_s25, 9 }
 0x302   : > { %1709 = vmatprep.subr.bf16.mxu0 %v1256_v16 }
 0x303   : > { %v1268_v27 = vpop.permute.xlu0 %1267  ;;  %v1255_v28 = vpack.c.bf16 %v1251_v23, %v1247_v21  ;;  %v1210_v29 = vpop.permute.xlu1 %1209 }
 0x304   : > { %v1217_v31 = vsel %vm1215_vm4, %v1210_v29, %v1214_v13  ;;  %v1219_v32 = vsel %vm1215_vm4, %v1206_v61, %v1210_v29  ;;  %v1284_v42 = vsel %vm1279_vm5, %v1264_v12, %v1268_v27  ;;  %vm921_vm4 = vcmp.lt.s32.totalorder %v3493_v14, 57 }
 0x305   : > { %597 = vrot.lane.b32.xlu0 %v3423_v62, %s3220_s16  ;;  %v1253_v34 = vmul.f32 %v1238_v17, %v1219_v32  ;;  %v1254_v35 = vmul.f32 %v1242_v18, %v1217_v31  ;;  %587 = vrot.lane.b32.xlu1 %v3425_v63, %s3220_s16  ;;  %v1312_v46 = vmul.f32 %v1298_v41, %v1284_v42  ;;  %v1353_v18 = vld [vmem:[#allocation3 + $0x24] ss:$8 sm:$0xf] }
 0x306   : > { %1710 = vmatpush1.bf16.msra.mxu0 %v1255_v28  ;;  %v1362_v24 = vrot.slane %v1353_v18, %v3497_v15  ;;  %v1358_v32 = vrot.slane %v1353_v18, %v3505_v20 }
 0x307   : > { %v1276_v37 = vpop.permute.xlu0 %1275  ;;  %v1257_v38 = vpack.c.bf16 %v1253_v34, %v1249_v30  ;;  %v1266_v39 = vpop.permute.xlu1 %1265  ;;  %v1258_v40 = vpack.c.bf16 %v1254_v35, %v1250_v33 }
 0x308   : > { %v1286_v49 = vsel %vm1279_vm5, %v1276_v37, %v1264_v12 }
 0x309   : > { %593 = vrot.lane.b32.xlu0 %v3429_v2, %s3220_s16  ;;  %591 = vrot.lane.b32.xlu1 %v3431_v6, %s3220_s16  ;;  %v1311_v56 = vmul.f32 %v1294_v47, %v1286_v49 }
 0x30a   : > { %1752 = vmatprep.subr.bf16.mxu1 %v1258_v40 }
 0x30b   : > { %1753 = vmatpush1.bf16.msra.mxu1 %v1257_v38  ;;  %v1272_v43 = vpop.permute.xlu0 %1271  ;;  %v1270_v44 = vpop.permute.xlu1 %1269  ;;  %v1366_v38 = vrot.slane %v1353_v18, %v3513_v25 }
 0x30c   : > { %v1285_v45 = vsel %vm1279_vm5, %v1266_v39, %v1270_v44  ;;  %v1282_v59 = vsel %vm1279_vm5, %v1268_v27, %v1272_v43  ;;  %v1280_v61 = vsel %vm1279_vm5, %v1272_v43, %v1276_v37 }
 0x30d   : > { %649 = vrot.lane.b32.xlu0 %v3417_v57, %s3221_s18  ;;  %v1316_v48 = vmul.f32 %v1298_v41, %v1285_v45  ;;  %599 = vrot.lane.b32.xlu1 %v3435_v8, %s3220_s16  ;;  %v1313_v10 = vmul.f32 %v1302_v53, %v1282_v59  ;;  %v1314_v13 = vmul.f32 %v1306_v54, %v1280_v61 }
 0x30e   : > { %v1391_v61 = vpack.c.bf16 %v3425_v63, %v3417_v57 }
 0x30f   : > { %v1328_v50 = vpop.permute.xlu0 %1327  ;;  %v1278_v51 = vpop.permute.xlu1 %1277  ;;  %v1320_v52 = vpack.c.bf16 %v1316_v48, %v1312_v46 }
 0x310   : > { %v1287_v55 = vsel %vm1279_vm5, %v1278_v51, %v1266_v39  ;;  %v1370_v39 = vrot.slane %v1353_v18, %v3515_v26 }
 0x311   : > { %653 = vrot.lane.b32.xlu0 %v3419_v58, %s3221_s18  ;;  %v1315_v60 = vmul.f32 %v1294_v47, %v1287_v55  ;;  %595 = vrot.lane.b32.xlu1 %v3439_v9, %s3220_s16  ;;  %v1425_v55 = vld [vmem:[#allocation3 + $0x26] ss:$8 sm:$0xf] }
 0x312   : > { %1711 = vmatprep.subr.bf16.mxu0 %v1320_v52 }
 0x313   : > { %v1332_v1 = vpop.permute.xlu0 %1331  ;;  %v1319_v4 = vpack.c.bf16 %v1315_v60, %v1311_v56  ;;  %v1274_v7 = vpop.permute.xlu1 %1273 }
 0x314   : > { %v1281_v11 = vsel %vm1279_vm5, %v1274_v7, %v1278_v51  ;;  %v1283_v12 = vsel %vm1279_vm5, %v1270_v44, %v1274_v7  ;;  %v1348_v27 = vsel %vm1343_vm6, %v1328_v50, %v1332_v1  ;;  %v1392_v51 = vpack.c.bf16 %v3431_v6, %v3419_v58 }
 0x315   : > { %661 = vrot.lane.b32.xlu0 %v3423_v62, %s3221_s18  ;;  %v1317_v16 = vmul.f32 %v1302_v53, %v1283_v12  ;;  %v1318_v17 = vmul.f32 %v1306_v54, %v1281_v11  ;;  %651 = vrot.lane.b32.xlu1 %v3425_v63, %s3221_s18  ;;  %v1376_v31 = vmul.f32 %v1362_v24, %v1348_v27  ;;  %vm985_vm5 = vcmp.lt.s32.totalorder %v3493_v14, 56 }
 0x316   : > { %1712 = vmatpush1.bf16.msra.mxu0 %v1319_v4  ;;  %v1434_v4 = vrot.slane %v1425_v55, %v3497_v15  ;;  %v1438_v27 = vrot.slane %v1425_v55, %v3513_v25 }
 0x317   : > { %v1340_v19 = vpop.permute.xlu0 %1339  ;;  %v1321_v21 = vpack.c.bf16 %v1317_v16, %v1313_v10  ;;  %v1330_v22 = vpop.permute.xlu1 %1329  ;;  %v1322_v23 = vpack.c.bf16 %v1318_v17, %v1314_v13  ;;  %v1394_v10 = vpack.c.bf16 %v3435_v8, %v3423_v62  ;;  %v1430_v17 = vrot.slane %v1425_v55, %v3505_v20 }
 0x318   : > { %v1350_v34 = vsel %vm1343_vm6, %v1340_v19, %v1328_v50 }
 0x319   : > { %657 = vrot.lane.b32.xlu0 %v3429_v2, %s3221_s18  ;;  %655 = vrot.lane.b32.xlu1 %v3431_v6, %s3221_s18  ;;  %v1375_v41 = vmul.f32 %v1358_v32, %v1350_v34 }
 0x31a   : > { %1754 = vmatprep.subr.bf16.mxu1 %v1322_v23 }
 0x31b   : > { %1755 = vmatpush1.bf16.msra.mxu1 %v1321_v21  ;;  %v1336_v28 = vpop.permute.xlu0 %1335  ;;  %v1334_v29 = vpop.permute.xlu1 %1333 }
 0x31c   : > { %v1349_v30 = vsel %vm1343_vm6, %v1330_v22, %v1334_v29  ;;  %v1346_v42 = vsel %vm1343_vm6, %v1332_v1, %v1336_v28  ;;  %v1344_v44 = vsel %vm1343_vm6, %v1336_v28, %v1340_v19  ;;  %v1393_v19 = vpack.c.bf16 %v3439_v9, %v3429_v2 }
 0x31d   : > { %713 = vrot.lane.b32.xlu0 %v3417_v57, %s3222_s19  ;;  %v1380_v33 = vmul.f32 %v1362_v24, %v1349_v30  ;;  %663 = vrot.lane.b32.xlu1 %v3435_v8, %s3221_s18  ;;  %v1377_v48 = vmul.f32 %v1366_v38, %v1346_v42  ;;  %v1378_v52 = vmul.f32 %v1370_v39, %v1344_v44 }
 0x31e   : > { %v1442_v28 = vrot.slane %v1425_v55, %v3515_v26 }
 0x31f   : > { %v1404_v35 = vpop.permute.xlu0 %1403  ;;  %v1342_v36 = vpop.permute.xlu1 %1341  ;;  %v1384_v37 = vpack.c.bf16 %v1380_v33, %v1376_v31 }
 0x320   : > { %v1351_v40 = vsel %vm1343_vm6, %v1342_v36, %v1330_v22 }
 0x321   : > { %717 = vrot.lane.b32.xlu0 %v3419_v58, %s3222_s19  ;;  %v1379_v43 = vmul.f32 %v1358_v32, %v1351_v40  ;;  %659 = vrot.lane.b32.xlu1 %v3439_v9, %s3221_s18 }
 0x322   : > { %1713 = vmatprep.subr.bf16.mxu0 %v1384_v37 }
 0x323   : > { %v1408_v45 = vpop.permute.xlu0 %1407  ;;  %v1383_v46 = vpack.c.bf16 %v1379_v43, %v1375_v41  ;;  %v1338_v47 = vpop.permute.xlu1 %1337  ;;  %v1489_v43 = vld [vmem:[#allocation3 + $0x27] ss:$8 sm:$0xf] }
 0x324   : > { %v1345_v49 = vsel %vm1343_vm6, %v1338_v47, %v1342_v36  ;;  %v1347_v50 = vsel %vm1343_vm6, %v1334_v29, %v1338_v47  ;;  %v1418_v7 = vsel %vm1415_vm7, %v1404_v35, %v1408_v45  ;;  %vm1049_vm6 = vcmp.lt.s32.totalorder %v3493_v14, 55 }
 0x325   : > { %725 = vrot.lane.b32.xlu0 %v3423_v62, %s3222_s19  ;;  %v1381_v53 = vmul.f32 %v1366_v38, %v1347_v50  ;;  %v1382_v54 = vmul.f32 %v1370_v39, %v1345_v49  ;;  %715 = vrot.lane.b32.xlu1 %v3425_v63, %s3222_s19  ;;  %v1448_v16 = vmul.f32 %v1434_v4, %v1418_v7 }
 0x326   : > { %1714 = vmatpush1.bf16.msra.mxu0 %v1383_v46 }
 0x327   : > { %1715 = vmatprep.subr.bf16.mxu0 %v1392_v51  ;;  %v1400_v56 = vpop.permute.xlu0 %1399  ;;  %v1385_v59 = vpack.c.bf16 %v1381_v53, %v1377_v48  ;;  %v1406_v60 = vpop.permute.xlu1 %1405  ;;  %v1386_v1 = vpack.c.bf16 %v1382_v54, %v1378_v52  ;;  %v1498_v48 = vrot.slane %v1489_v43, %v3497_v15  ;;  %v1494_v54 = vrot.slane %v1489_v43, %v3505_v20 }
 0x328   : > { %v1420_v21 = vsel %vm1415_vm7, %v1400_v56, %v1404_v35 }
 0x329   : > { %721 = vrot.lane.b32.xlu0 %v3429_v2, %s3222_s19  ;;  %719 = vrot.lane.b32.xlu1 %v3431_v6, %s3222_s19  ;;  %v1447_v30 = vmul.f32 %v1430_v17, %v1420_v21 }
 0x32a   : > { %1716 = vmatpush1.bf16.msra.mxu0 %v1391_v61  ;;  %1756 = vmatprep.subr.bf16.mxu1 %v1386_v1  ;;  %v1502_v1 = vrot.slane %v1489_v43, %v3513_v25 }
 0x32b   : > { %v1412_v11 = vpop.permute.xlu0 %1411  ;;  %1757 = vmatpush1.bf16.msra.mxu1 %v1385_v59  ;;  %v1410_v12 = vpop.permute.xlu1 %1409 }
 0x32c   : > { %v1419_v13 = vsel %vm1415_vm7, %v1406_v60, %v1410_v12  ;;  %1758 = vmatprep.subr.bf16.mxu1 %v1394_v10  ;;  %v1416_v31 = vsel %vm1415_vm7, %v1408_v45, %v1412_v11  ;;  %v1422_v33 = vsel %vm1415_vm7, %v1412_v11, %v1400_v56 }
 0x32d   : > { %777 = vrot.lane.b32.xlu0 %v3417_v57, %s3223_s20  ;;  %v1452_v18 = vmul.f32 %v1434_v4, %v1419_v13  ;;  %727 = vrot.lane.b32.xlu1 %v3435_v8, %s3222_s19  ;;  %v1449_v37 = vmul.f32 %v1438_v27, %v1416_v31  ;;  %v1450_v40 = vmul.f32 %v1442_v28, %v1422_v33 }
 0x32e   : > { %v1506_v4 = vrot.slane %v1489_v43, %v3515_v26 }
 0x32f   : > { %v1468_v22 = vpop.permute.xlu0 %1467  ;;  %1759 = vmatpush1.bf16.msra.mxu1 %v1393_v19  ;;  %v1402_v23 = vpop.permute.xlu1 %1401  ;;  %v1456_v24 = vpack.c.bf16 %v1452_v18, %v1448_v16 }
 0x330   : > { %v1421_v29 = vsel %vm1415_vm7, %v1402_v23, %v1406_v60 }
 0x331   : > { %781 = vrot.lane.b32.xlu0 %v3419_v58, %s3223_s20  ;;  %v1451_v32 = vmul.f32 %v1430_v17, %v1421_v29  ;;  %723 = vrot.lane.b32.xlu1 %v3439_v9, %s3222_s19 }
 0x332   : > { %1717 = vmatprep.subr.bf16.mxu0 %v1456_v24 }
 0x333   : > { %v1472_v34 = vpop.permute.xlu0 %1471  ;;  %v1455_v35 = vpack.c.bf16 %v1451_v32, %v1447_v30  ;;  %v1414_v36 = vpop.permute.xlu1 %1413 }
 0x334   : > { %v1417_v38 = vsel %vm1415_vm7, %v1410_v12, %v1414_v36  ;;  %v1423_v39 = vsel %vm1415_vm7, %v1414_v36, %v1402_v23  ;;  %v1482_v49 = vsel %vm1479_vm8, %v1468_v22, %v1472_v34 }
 0x335   : > { %789 = vrot.lane.b32.xlu0 %v3423_v62, %s3223_s20  ;;  %v1453_v41 = vmul.f32 %v1438_v27, %v1417_v38  ;;  %v1454_v42 = vmul.f32 %v1442_v28, %v1423_v39  ;;  %779 = vrot.lane.b32.xlu1 %v3425_v63, %s3223_s20  ;;  %v1512_v53 = vmul.f32 %v1498_v48, %v1482_v49  ;;  %v1553_v28 = vld [vmem:[#allocation3 + $0x40] ss:$8 sm:$0xf] }
 0x336   : > { %1718 = vmatpush1.bf16.msra.mxu0 %v1455_v35  ;;  %v1562_v33 = vrot.slane %v1553_v28, %v3497_v15  ;;  %v1558_v39 = vrot.slane %v1553_v28, %v3505_v20 }
 0x337   : > { %v1464_v44 = vpop.permute.xlu0 %1463  ;;  %v1457_v45 = vpack.c.bf16 %v1453_v41, %v1449_v37  ;;  %v1470_v46 = vpop.permute.xlu1 %1469  ;;  %v1458_v47 = vpack.c.bf16 %v1454_v42, %v1450_v40 }
 0x338   : > { %v1484_v56 = vsel %vm1479_vm8, %v1464_v44, %v1468_v22 }
 0x339   : > { %785 = vrot.lane.b32.xlu0 %v3429_v2, %s3223_s20  ;;  %783 = vrot.lane.b32.xlu1 %v3431_v6, %s3223_s20  ;;  %v1511_v10 = vmul.f32 %v1494_v54, %v1484_v56 }
 0x33a   : > { %1760 = vmatprep.subr.bf16.mxu1 %v1458_v47 }
 0x33b   : > { %1761 = vmatpush1.bf16.msra.mxu1 %v1457_v45  ;;  %v1476_v50 = vpop.permute.xlu0 %1475  ;;  %v1474_v51 = vpop.permute.xlu1 %1473  ;;  %v1566_v45 = vrot.slane %v1553_v28, %v3513_v25 }
 0x33c   : > { %v1483_v52 = vsel %vm1479_vm8, %v1470_v46, %v1474_v51  ;;  %v1480_v11 = vsel %vm1479_vm8, %v1472_v34, %v1476_v50  ;;  %v1486_v13 = vsel %vm1479_vm8, %v1476_v50, %v1464_v44 }
 0x33d   : > { %841 = vrot.lane.b32.xlu0 %v3417_v57, %s3224_s26  ;;  %v1516_v55 = vmul.f32 %v1498_v48, %v1483_v52  ;;  %791 = vrot.lane.b32.xlu1 %v3435_v8, %s3223_s20  ;;  %v1513_v19 = vmul.f32 %v1502_v1, %v1480_v11  ;;  %v1514_v23 = vmul.f32 %v1506_v4, %v1486_v13 }
 0x33f   : > { %v1532_v59 = vpop.permute.xlu0 %1531  ;;  %v1466_v60 = vpop.permute.xlu1 %1465  ;;  %v1520_v61 = vpack.c.bf16 %v1516_v55, %v1512_v53 }
 0x340   : > { %v1485_v7 = vsel %vm1479_vm8, %v1466_v60, %v1470_v46  ;;  %v1570_v46 = vrot.slane %v1553_v28, %v3515_v26 }
 0x341   : > { %845 = vrot.lane.b32.xlu0 %v3419_v58, %s3224_s26  ;;  %v1515_v12 = vmul.f32 %v1494_v54, %v1485_v7  ;;  %787 = vrot.lane.b32.xlu1 %v3439_v9, %s3223_s20 }
 0x342   : > { %1719 = vmatprep.subr.bf16.mxu0 %v1520_v61 }
 0x343   : > { %v1536_v16 = vpop.permute.xlu0 %1535  ;;  %v1519_v17 = vpack.c.bf16 %v1515_v12, %v1511_v10  ;;  %v1478_v18 = vpop.permute.xlu1 %1477 }
 0x344   : > { %v1481_v21 = vsel %vm1479_vm8, %v1474_v51, %v1478_v18  ;;  %v1487_v22 = vsel %vm1479_vm8, %v1478_v18, %v1466_v60  ;;  %v1546_v34 = vsel %vm1543_vm9, %v1532_v59, %v1536_v16 }
 0x345   : > { %853 = vrot.lane.b32.xlu0 %v3423_v62, %s3224_s26  ;;  %v1517_v24 = vmul.f32 %v1502_v1, %v1481_v21  ;;  %v1518_v27 = vmul.f32 %v1506_v4, %v1487_v22  ;;  %843 = vrot.lane.b32.xlu1 %v3425_v63, %s3224_s26  ;;  %v1576_v38 = vmul.f32 %v1562_v33, %v1546_v34  ;;  %v1617_v4 = vld [vmem:[#allocation3 + $0x41] ss:$8 sm:$0xf] }
 0x346   : > { %1720 = vmatpush1.bf16.msra.mxu0 %v1519_v17  ;;  %v1626_v13 = vrot.slane %v1617_v4, %v3497_v15  ;;  %v1622_v22 = vrot.slane %v1617_v4, %v3505_v20 }
 0x347   : > { %v1528_v29 = vpop.permute.xlu0 %1527  ;;  %v1521_v30 = vpack.c.bf16 %v1517_v24, %v1513_v19  ;;  %v1534_v31 = vpop.permute.xlu1 %1533  ;;  %v1522_v32 = vpack.c.bf16 %v1518_v27, %v1514_v23 }
 0x348   : > { %v1548_v41 = vsel %vm1543_vm9, %v1528_v29, %v1532_v59 }
 0x349   : > { %849 = vrot.lane.b32.xlu0 %v3429_v2, %s3224_s26  ;;  %847 = vrot.lane.b32.xlu1 %v3431_v6, %s3224_s26  ;;  %v1575_v48 = vmul.f32 %v1558_v39, %v1548_v41 }
 0x34a   : > { %1762 = vmatprep.subr.bf16.mxu1 %v1522_v32 }
 0x34b   : > { %1763 = vmatpush1.bf16.msra.mxu1 %v1521_v30  ;;  %v1540_v35 = vpop.permute.xlu0 %1539  ;;  %v1538_v36 = vpop.permute.xlu1 %1537  ;;  %v1630_v30 = vrot.slane %v1617_v4, %v3513_v25 }
 0x34c   : > { %v1547_v37 = vsel %vm1543_vm9, %v1534_v31, %v1538_v36  ;;  %v1544_v49 = vsel %vm1543_vm9, %v1536_v16, %v1540_v35  ;;  %v1550_v51 = vsel %vm1543_vm9, %v1540_v35, %v1528_v29 }
 0x34d   : > { %905 = vrot.lane.b32.xlu0 %v3417_v57, %s3225_s28  ;;  %v1580_v40 = vmul.f32 %v1562_v33, %v1547_v37  ;;  %855 = vrot.lane.b32.xlu1 %v3435_v8, %s3224_s26  ;;  %v1577_v55 = vmul.f32 %v1566_v45, %v1544_v49  ;;  %v1578_v60 = vmul.f32 %v1570_v46, %v1550_v51 }
 0x34f   : > { %v1596_v42 = vpop.permute.xlu0 %1595  ;;  %v1530_v43 = vpop.permute.xlu1 %1529  ;;  %v1584_v44 = vpack.c.bf16 %v1580_v40, %v1576_v38 }
 0x350   : > { %v1549_v47 = vsel %vm1543_vm9, %v1530_v43, %v1534_v31  ;;  %v1634_v31 = vrot.slane %v1617_v4, %v3515_v26 }
 0x351   : > { %909 = vrot.lane.b32.xlu0 %v3419_v58, %s3225_s28  ;;  %v1579_v50 = vmul.f32 %v1558_v39, %v1549_v47  ;;  %851 = vrot.lane.b32.xlu1 %v3439_v9, %s3224_s26  ;;  %v547_v47 = vld [vmem:[#allocation3] ss:$8 sm:$0xf]  ;;  %s4408_s26 = scalar_lea.hbm %s4456_s6, %s2944_s14 }
 0x352   : > { %1721 = vmatprep.subr.bf16.mxu0 %v1584_v44 }
 0x353   : > { %v1600_v52 = vpop.permute.xlu0 %1599  ;;  %v1583_v53 = vpack.c.bf16 %v1579_v50, %v1575_v48  ;;  %v1542_v54 = vpop.permute.xlu1 %1541  ;;  %v1892_v48 = vld [vmem:[#allocation3 + $0x42] ss:$8 sm:$0xf] }
 0x354   : > { %v1545_v56 = vsel %vm1543_vm9, %v1538_v36, %v1542_v54  ;;  %v1551_v59 = vsel %vm1543_vm9, %v1542_v54, %v1530_v43  ;;  %v1610_v16 = vsel %vm1607_vm10, %v1596_v42, %v1600_v52  ;;  %v3053_v43 = vld [vmem:[#allocation6 + $0x10] ss:$8 sps:$4 sm:$0xff]   ;;  %v1897_v54 = vrot.slane %v1892_v48, %v3505_v20 }
 0x355   : > { %917 = vrot.lane.b32.xlu0 %v3423_v62, %s3225_s28  ;;  %v1581_v61 = vmul.f32 %v1566_v45, %v1545_v56  ;;  %v1582_v1 = vmul.f32 %v1570_v46, %v1551_v59  ;;  %907 = vrot.lane.b32.xlu1 %v3425_v63, %s3225_s28  ;;  %v1640_v21 = vmul.f32 %v1626_v13, %v1610_v16 }
 0x356   : > { %1722 = vmatpush1.bf16.msra.mxu0 %v1583_v53  ;;  %v556_v53 = vrot.slane %v547_v47, %v3497_v15  ;;  %v552_v59 = vrot.slane %v547_v47, %v3505_v20  ;;  %v1909_v4 = vrot.slane %v1892_v48, %v3515_v26 }
 0x357   : > { %v1592_v7 = vpop.permute.xlu0 %1591  ;;  %v1585_v10 = vpack.c.bf16 %v1581_v61, %v1577_v55  ;;  %v1598_v11 = vpop.permute.xlu1 %1597  ;;  %v1586_v12 = vpack.c.bf16 %v1582_v1, %v1578_v60 }
 0x358   : > { %v1612_v24 = vsel %vm1607_vm10, %v1592_v7, %v1596_v42 }
 0x359   : > { %913 = vrot.lane.b32.xlu0 %v3429_v2, %s3225_s28  ;;  %911 = vrot.lane.b32.xlu1 %v3431_v6, %s3225_s28  ;;  %v1639_v33 = vmul.f32 %v1622_v22, %v1612_v24 }
 0x35a   : > { %1764 = vmatprep.subr.bf16.mxu1 %v1586_v12 }
 0x35b   : > { %1765 = vmatpush1.bf16.msra.mxu1 %v1585_v10  ;;  %v1604_v17 = vpop.permute.xlu0 %1603  ;;  %v1602_v18 = vpop.permute.xlu1 %1601 }
 0x35c   : > { %v1611_v19 = vsel %vm1607_vm10, %v1598_v11, %v1602_v18  ;;  %v1608_v34 = vsel %vm1607_vm10, %v1600_v52, %v1604_v17  ;;  %v1614_v36 = vsel %vm1607_vm10, %v1604_v17, %v1592_v7 }
 0x35d   : > { %969 = vrot.lane.b32.xlu0 %v3417_v57, %s3226_s11  ;;  %v1644_v23 = vmul.f32 %v1626_v13, %v1611_v19  ;;  %919 = vrot.lane.b32.xlu1 %v3435_v8, %s3225_s28  ;;  %v1641_v40 = vmul.f32 %v1630_v30, %v1608_v34  ;;  %v1642_v44 = vmul.f32 %v1634_v31, %v1614_v36 }
 0x35e   : > { %v560_v13 = vrot.slane %v547_v47, %v3513_v25 }
 0x35f   : > { %v521_v27 = vpop.permute.xlu0 %520  ;;  %v1594_v28 = vpop.permute.xlu1 %1593  ;;  %v1648_v29 = vpack.c.bf16 %v1644_v23, %v1640_v21 }
 0x360   : > { %v1613_v32 = vsel %vm1607_vm10, %v1594_v28, %v1598_v11 }
 0x361   : > { %973 = vrot.lane.b32.xlu0 %v3419_v58, %s3226_s11  ;;  %v1643_v35 = vmul.f32 %v1622_v22, %v1613_v32  ;;  %915 = vrot.lane.b32.xlu1 %v3439_v9, %s3225_s28 }
 0x362   : > { %1723 = vmatprep.subr.bf16.mxu0 %v1648_v29 }
 0x363   : > { %v525_v37 = vpop.permute.xlu0 %524  ;;  %v1647_v38 = vpack.c.bf16 %v1643_v35, %v1639_v33  ;;  %v1606_v39 = vpop.permute.xlu1 %1605 }
 0x364   : > { %v1609_v41 = vsel %vm1607_vm10, %v1602_v18, %v1606_v39  ;;  %v1615_v42 = vsel %vm1607_vm10, %v1606_v39, %v1594_v28  ;;  %v543_v55 = vsel %vm538_vm11, %v521_v27, %v525_v37  ;;  %v564_v18 = vrot.slane %v547_v47, %v3515_v26 }
 0x365   : > { %981 = vrot.lane.b32.xlu0 %v3423_v62, %s3226_s11  ;;  %v1645_v45 = vmul.f32 %v1630_v30, %v1609_v41  ;;  %v1646_v46 = vmul.f32 %v1634_v31, %v1615_v42  ;;  %971 = vrot.lane.b32.xlu1 %v3425_v63, %s3226_s11  ;;  %v570_v61 = vmul.f32 %v556_v53, %v543_v55 }
 0x366   : > { %1724 = vmatpush1.bf16.msra.mxu0 %v1647_v38  ;;  %v3823_v1 = vmul.f32 %v1897_v54, %v543_v55  ;;  %v1901_v31 = vrot.slane %v1892_v48, %v3497_v15 }
 0x367   : > { %v533_v49 = vpop.permute.xlu0 %532  ;;  %v1649_v50 = vpack.c.bf16 %v1645_v45, %v1641_v40  ;;  %v523_v51 = vpop.permute.xlu1 %522  ;;  %v1650_v52 = vpack.c.bf16 %v1646_v46, %v1642_v44  ;;  %v611_v44 = vld [vmem:[#allocation3 + $0x1] ss:$8 sm:$0xf]  ;;  %v1931_v46 = vld [vmem:[#allocation3 + $0x43] ss:$8 sm:$0xf] }
 0x368   : > { %v545_v10 = vsel %vm538_vm11, %v533_v49, %v521_v27 }
 0x369   : > { %977 = vrot.lane.b32.xlu0 %v3429_v2, %s3226_s11  ;;  %1740 = vmatmul.mubr.bf16.vlgmr.msra.gmra.mrb[4].mxu0 %v3053_v43  ;;  %v569_v22 = vmul.f32 %v552_v59, %v545_v10  ;;  %v3841_v23 = vmul.f32 %v1909_v4, %v545_v10 }
 0x36a   : > { %975 = vrot.lane.b32.xlu1 %v3431_v6, %s3226_s11  ;;  %1766 = vmatprep.subr.bf16.mxu1 %v1650_v52  ;;  %v620_v52 = vrot.slane %v611_v44, %v3497_v15 }
 0x36b   : > { %1767 = vmatpush1.bf16.msra.mxu1 %v1649_v50  ;;  %v529_v56 = vpop.permute.xlu0 %528  ;;  %v527_v60 = vpop.permute.xlu1 %526 }
 0x36c   : > { %v544_v7 = vsel %vm538_vm11, %v523_v51, %v527_v60  ;;  %v541_v24 = vsel %vm538_vm11, %v525_v37, %v529_v56  ;;  %v539_v28 = vsel %vm538_vm11, %v529_v56, %v533_v49 }
 0x36d   : > { %1033 = vrot.lane.b32.xlu0 %v3417_v57, %s3227_s29  ;;  %v574_v11 = vmul.f32 %v556_v53, %v544_v7  ;;  %v3832_v12 = vmul.f32 %v1897_v54, %v544_v7  ;;  %v1905_v57 = vrot.slane %v1892_v48, %v3513_v25  ;;  %v571_v33 = vmul.f32 %v560_v13, %v541_v24 }
 0x36e   : > { %983 = vrot.lane.b32.xlu1 %v3435_v8, %s3226_s11  ;;  %1783 = vmatmul.mubr.bf16.vlgmr.msra.gmra.mrb[4].mxu1 %v3053_v43  ;;  %v3872_v45 = vmul.f32 %v1901_v31, %v541_v24  ;;  %v1936_v53 = vrot.slane %v1931_v46, %v3505_v20 }
 0x36f   : > { %v586_v16 = vpop.permute.xlu0 %585  ;;  %v535_v19 = vpop.permute.xlu1 %534  ;;  %v578_v21 = vpack.c.bf16 %v574_v11, %v570_v61  ;;  %v3858_v37 = vmul.f32 %v1905_v57, %v539_v28  ;;  %v624_v11 = vrot.slane %v611_v44, %v3513_v25  ;;  %v4534_v14 = vpack.c.bf16 %v3832_v12, %v3823_v1 }
 0x370   : > { %v546_v27 = vsel %vm538_vm11, %v535_v19, %v523_v51  ;;  %v3056_v51 = vld [vmem:[#allocation6 + $0x4] ss:$8 sps:$4 sm:$0xff]  }
 0x371   : > { %1037 = vrot.lane.b32.xlu0 %v3419_v58, %s3227_s29  ;;  %v573_v29 = vmul.f32 %v552_v59, %v546_v27  ;;  %v3851_v30 = vmul.f32 %v1909_v4, %v546_v27  ;;  %1805 = vmatprep.subr.bf16.mxu0 %v578_v21  ;;  %v572_v58 = vmul.f32 %v564_v18, %v539_v28 }
 0x372   : > { %979 = vrot.lane.b32.xlu1 %v3439_v9, %s3226_s11  ;;  %2924 = vmatprep.mubr.msk.bf16.mxu0 %vm1703_vm3, %v3056_v51  ;;  %v616_v59 = vrot.slane %v611_v44, %v3505_v20  ;;  %s3228_s11 = smov [#allocation8]  }
 0x373   : > { %v590_v32 = vpop.permute.xlu0 %589  ;;  %v577_v34 = vpack.c.bf16 %v573_v29, %v569_v22  ;;  %v531_v35 = vpop.permute.xlu1 %530  ;;  %2925 = vmatprep.mubr.msk.bf16.mxu1 %vm1703_vm3, %v3056_v51  ;;  %v1970_v51 = vld [vmem:[#allocation3 + $0x44] ss:$8 sm:$0xf] }
 0x374   : > { %v540_v38 = vsel %vm538_vm11, %v531_v35, %v535_v19  ;;  %v542_v39 = vsel %vm538_vm11, %v527_v60, %v531_v35  ;;  %v606_v54 = vsel %vm601_vm12, %v586_v16, %v590_v32  ;;  %v1948_v60 = vrot.slane %v1931_v46, %v3515_v26 }
 0x375   : > { %1045 = vrot.lane.b32.xlu0 %v3423_v62, %s3227_s29  ;;  %v575_v40 = vmul.f32 %v560_v13, %v542_v39  ;;  %v576_v41 = vmul.f32 %v564_v18, %v540_v38  ;;  %v3866_v42 = vmul.f32 %v1901_v31, %v542_v39  ;;  %v3868_v43 = vmul.f32 %v1905_v57, %v540_v38 }
 0x376   : > { %1035 = vrot.lane.b32.xlu1 %v3425_v63, %s3227_s29  ;;  %1806 = vmatpush1.bf16.msra.mxu0 %v577_v34  ;;  %v3893_v4 = vmul.f32 %v1936_v53, %v606_v54  ;;  %v628_v57 = vrot.slane %v611_v44, %v3515_v26  ;;  %v1944_v19 = vrot.slane %v1931_v46, %v3513_v25 }
 0x377   : > { %v598_v47 = vpop.permute.xlu0 %597  ;;  %v579_v48 = vpack.c.bf16 %v575_v40, %v571_v33  ;;  %v588_v49 = vpop.permute.xlu1 %587  ;;  %v580_v50 = vpack.c.bf16 %v576_v41, %v572_v58  ;;  %v1940_v33 = vrot.slane %v1931_v46, %v3497_v15  ;;  %v4539_v12 = vpack.c.bf16 %v3868_v43, %v3858_v37 }
 0x379   : > { %1041 = vrot.lane.b32.xlu0 %v3429_v2, %s3227_s29  ;;  %1848 = vmatprep.subr.bf16.mxu1 %v580_v50  ;;  %v634_v2 = vmul.f32 %v620_v52, %v606_v54 }
 0x37a   : > { %1039 = vrot.lane.b32.xlu1 %v3431_v6, %s3227_s29  ;;  %1849 = vmatpush1.bf16.msra.mxu1 %v579_v48  ;;  %v608_v6 = vsel %vm601_vm12, %v598_v47, %v586_v16 }
 0x37b   : > { %v594_v55 = vpop.permute.xlu0 %593  ;;  %v592_v56 = vpop.permute.xlu1 %591  ;;  %v633_v24 = vmul.f32 %v616_v59, %v608_v6  ;;  %v3906_v16 = vmul.f32 %v1948_v60, %v608_v6 }
 0x37c   : > { %v607_v61 = vsel %vm601_vm12, %v588_v49, %v592_v56  ;;  %v604_v27 = vsel %vm601_vm12, %v590_v32, %v594_v55  ;;  %v602_v28 = vsel %vm601_vm12, %v594_v55, %v598_v47 }
 0x37d   : > { %v638_v7 = vmul.f32 %v620_v52, %v607_v61  ;;  %v3897_v10 = vmul.f32 %v1936_v53, %v607_v61  ;;  %v635_v35 = vmul.f32 %v624_v11, %v604_v27  ;;  %v636_v39 = vmul.f32 %v628_v57, %v602_v28 }
 0x37e   : > { %1047 = vrot.lane.b32.xlu1 %v3435_v8, %s3227_s29  ;;  %v3921_v40 = vmul.f32 %v1944_v19, %v602_v28  ;;  %v3931_v50 = vmul.f32 %v1940_v33, %v604_v27 }
 0x37f   : > { %v650_v13 = vpop.permute.xlu0 %649  ;;  %v600_v21 = vpop.permute.xlu1 %599  ;;  %v642_v22 = vpack.c.bf16 %v638_v7, %v634_v2 }
 0x380   : > { %v609_v8 = vsel %vm601_vm12, %v600_v21, %v588_v49  ;;  %v675_v49 = vld [vmem:[#allocation3 + $0x2] ss:$8 sm:$0xf] }
 0x381   : > { %v637_v29 = vmul.f32 %v616_v59, %v609_v8  ;;  %v3914_v31 = vmul.f32 %v1948_v60, %v609_v8  ;;  %1807 = vmatprep.subr.bf16.mxu0 %v642_v22  ;;  %v684_v2 = vrot.slane %v675_v49, %v3497_v15  ;;  %v1975_v60 = vrot.slane %v1970_v51, %v3505_v20 }
 0x382   : > { %1043 = vrot.lane.b32.xlu1 %v3439_v9, %s3227_s29  ;;  %s3136_s29 = sshll.u32 %s3228_s11, 4  ;;  %s3137_s29 = int_to_ptr.vmem [resolvable:$false] %s3136_s29 }
 0x383   : > { %v654_v34 = vpop.permute.xlu0 %653  ;;  %v641_v58 = vpack.c.bf16 %v637_v29, %v633_v24  ;;  %v596_v38 = vpop.permute.xlu1 %595  ;;  %s3138_s10 = scalar_lea.vmem %s3137_s29, 1024 }
 0x384   : > { %v603_v41 = vsel %vm601_vm12, %v596_v38, %v600_v21  ;;  %v605_v44 = vsel %vm601_vm12, %v592_v56, %v596_v38  ;;  %v670_v61 = vsel %vm665_vm13, %v650_v13, %v654_v34 }
 0x385   : > { %v639_v9 = vmul.f32 %v624_v11, %v605_v44  ;;  %v640_v47 = vmul.f32 %v628_v57, %v603_v41  ;;  %v3927_v48 = vmul.f32 %v1940_v33, %v605_v44  ;;  %v3929_v46 = vmul.f32 %v1944_v19, %v603_v41  ;;  %1808 = vmatpush1.bf16.msra.mxu0 %v641_v58 }
 0x386   : > { %v698_v11 = vmul.f32 %v684_v2, %v670_v61  ;;  %v680_v57 = vrot.slane %v675_v49, %v3505_v20  ;;  %v1987_v19 = vrot.slane %v1970_v51, %v3515_v26  ;;  %v3946_v22 = vmul.f32 %v1975_v60, %v670_v61 }
 0x387   : > { %v662_v52 = vpop.permute.xlu0 %661  ;;  %v643_v53 = vpack.c.bf16 %v639_v9, %v635_v35  ;;  %v652_v55 = vpop.permute.xlu1 %651  ;;  %v644_v56 = vpack.c.bf16 %v640_v47, %v636_v39  ;;  %v688_v33 = vrot.slane %v675_v49, %v3513_v25  ;;  %v692_v35 = vrot.slane %v675_v49, %v3515_v26 }
 0x388   : > { %v672_v24 = vsel %vm665_vm13, %v662_v52, %v650_v13  ;;  %v1983_v41 = vrot.slane %v1970_v51, %v3513_v25  ;;  %v1979_v49 = vrot.slane %v1970_v51, %v3497_v15 }
 0x389   : > { %1850 = vmatprep.subr.bf16.mxu1 %v644_v56  ;;  %v697_v39 = vmul.f32 %v680_v57, %v672_v24  ;;  %v3961_v9 = vmul.f32 %v1987_v19, %v672_v24 }
 0x38a   : > { %1851 = vmatpush1.bf16.msra.mxu1 %v643_v53 }
 0x38b   : > { %v658_v6 = vpop.permute.xlu0 %657  ;;  %v656_v7 = vpop.permute.xlu1 %655 }
 0x38c   : > { %v671_v21 = vsel %vm665_vm13, %v652_v55, %v656_v7  ;;  %v668_v44 = vsel %vm665_vm13, %v654_v34, %v658_v6  ;;  %v666_v47 = vsel %vm665_vm13, %v658_v6, %v662_v52 }
 0x38d   : > { %v702_v27 = vmul.f32 %v684_v2, %v671_v21  ;;  %v3950_v8 = vmul.f32 %v1975_v60, %v671_v21  ;;  %v699_v60 = vmul.f32 %v688_v33, %v668_v44  ;;  %v700_v21 = vmul.f32 %v692_v35, %v666_v47 }
 0x38f   : > { %v714_v28 = vpop.permute.xlu0 %713  ;;  %v664_v58 = vpop.permute.xlu1 %663  ;;  %v706_v38 = vpack.c.bf16 %v702_v27, %v698_v11  ;;  %v739_v27 = vld [vmem:[#allocation3 + $0x3] ss:$8 sm:$0xf] }
 0x390   : > { %v673_v13 = vsel %vm665_vm13, %v664_v58, %v652_v55  ;;  %v3970_v55 = vmul.f32 %v1983_v41, %v666_v47  ;;  %v756_v34 = vrot.slane %v739_v27, %v3515_v26 }
 0x391   : > { %v701_v53 = vmul.f32 %v680_v57, %v673_v13  ;;  %v3965_v56 = vmul.f32 %v1987_v19, %v673_v13  ;;  %1809 = vmatprep.subr.bf16.mxu0 %v706_v38  ;;  %v3980_v38 = vmul.f32 %v1979_v49, %v668_v44 }
 0x393   : > { %v718_v2 = vpop.permute.xlu0 %717  ;;  %v705_v61 = vpack.c.bf16 %v701_v53, %v697_v39  ;;  %v660_v11 = vpop.permute.xlu1 %659  ;;  %v2009_v39 = vld [vmem:[#allocation3 + $0x45] ss:$8 sm:$0xf]  ;;  %v4544_v37 = vpack.c.bf16 %v3965_v56, %v3961_v9 }
 0x394   : > { %v667_v24 = vsel %vm665_vm13, %v660_v11, %v664_v58  ;;  %v669_v52 = vsel %vm665_vm13, %v656_v7, %v660_v11  ;;  %v734_v44 = vsel %vm729_vm14, %v714_v28, %v718_v2  ;;  %v744_v11 = vrot.slane %v739_v27, %v3505_v20 }
 0x395   : > { %v703_v6 = vmul.f32 %v688_v33, %v669_v52  ;;  %v704_v57 = vmul.f32 %v692_v35, %v667_v24  ;;  %v3976_v19 = vmul.f32 %v1979_v49, %v669_v52  ;;  %v3978_v51 = vmul.f32 %v1983_v41, %v667_v24  ;;  %1810 = vmatpush1.bf16.msra.mxu0 %v705_v61 }
 0x396   : > { %v748_v33 = vrot.slane %v739_v27, %v3497_v15  ;;  %v2014_v41 = vrot.slane %v2009_v39, %v3505_v20  ;;  %v2026_v24 = vrot.slane %v2009_v39, %v3515_v26  ;;  %v752_v58 = vrot.slane %v739_v27, %v3513_v25 }
 0x397   : > { %v726_v13 = vpop.permute.xlu0 %725  ;;  %v707_v47 = vpack.c.bf16 %v703_v6, %v699_v60  ;;  %v716_v53 = vpop.permute.xlu1 %715  ;;  %v708_v7 = vpack.c.bf16 %v704_v57, %v700_v21  ;;  %v2018_v27 = vrot.slane %v2009_v39, %v3497_v15  ;;  %v4538_v1 = vpack.c.bf16 %v3976_v19, %v3980_v38 }
 0x398   : > { %v762_v60 = vmul.f32 %v748_v33, %v734_v44  ;;  %v3995_v52 = vmul.f32 %v2014_v41, %v734_v44  ;;  %v736_v6 = vsel %vm729_vm14, %v726_v13, %v714_v28  ;;  %v2022_v44 = vrot.slane %v2009_v39, %v3513_v25 }
 0x399   : > { %1852 = vmatprep.subr.bf16.mxu1 %v708_v7  ;;  %v761_v32 = vmul.f32 %v744_v11, %v736_v6 }
 0x39a   : > { %1853 = vmatpush1.bf16.msra.mxu1 %v707_v47 }
 0x39b   : > { %v722_v49 = vpop.permute.xlu0 %721  ;;  %v720_v61 = vpop.permute.xlu1 %719 }
 0x39c   : > { %v735_v21 = vsel %vm729_vm14, %v716_v53, %v720_v61  ;;  %v732_v62 = vsel %vm729_vm14, %v718_v2, %v722_v49 }
 0x39d   : > { %v766_v57 = vmul.f32 %v748_v33, %v735_v21  ;;  %v3999_v0 = vmul.f32 %v2014_v41, %v735_v21  ;;  %v4010_v33 = vmul.f32 %v2026_v24, %v736_v6  ;;  %v730_v41 = vsel %vm729_vm14, %v722_v49, %v726_v13 }
 0x39e   : > { %v764_v36 = vmul.f32 %v756_v34, %v730_v41 }
 0x39f   : > { %v778_v7 = vpop.permute.xlu0 %777  ;;  %v728_v54 = vpop.permute.xlu1 %727  ;;  %v770_v29 = vpack.c.bf16 %v766_v57, %v762_v60  ;;  %4504 = vst [vmem:[#allocation14_spill] sm:$0xff] %v4010_v33  ;;  %v763_v57 = vmul.f32 %v752_v58, %v732_v62  ;;  %v4545_v43 = vpack.c.bf16 %v3999_v0, %v3995_v52 }
 0x3a0   : > { %v737_v28 = vsel %vm729_vm14, %v728_v54, %v716_v53  ;;  %v4019_v53 = vmul.f32 %v2022_v44, %v730_v41 }
 0x3a1   : > { %v765_v21 = vmul.f32 %v744_v11, %v737_v28  ;;  %v4014_v47 = vmul.f32 %v2026_v24, %v737_v28  ;;  %1811 = vmatprep.subr.bf16.mxu0 %v770_v29  ;;  %v4029_v24 = vmul.f32 %v2018_v27, %v732_v62  ;;  %v2048_v28 = vld [vmem:[#allocation3 + $0x46] ss:$8 sm:$0xf] }
 0x3a2   : > { %4505 = vst [vmem:[#allocation15_spill] sm:$0xff] %v4019_v53 }
 0x3a3   : > { %v782_v60 = vpop.permute.xlu0 %781  ;;  %v769_v35 = vpack.c.bf16 %v765_v21, %v761_v32  ;;  %v724_v18 = vpop.permute.xlu1 %723  ;;  %v803_v32 = vld [vmem:[#allocation3 + $0x4] ss:$8 sm:$0xf] }
 0x3a4   : > { %v731_v6 = vsel %vm729_vm14, %v724_v18, %v728_v54  ;;  %v733_v13 = vsel %vm729_vm14, %v720_v61, %v724_v18  ;;  %v2053_v61 = vrot.slane %v2048_v28, %v3505_v20  ;;  %v798_v62 = vsel %vm793_vm15, %v778_v7, %v782_v60 }
 0x3a5   : > { %v767_v49 = vmul.f32 %v752_v58, %v733_v13  ;;  %v768_v29 = vmul.f32 %v756_v34, %v731_v6  ;;  %v4025_v11 = vmul.f32 %v2018_v27, %v733_v13  ;;  %v4027_v39 = vmul.f32 %v2022_v44, %v731_v6  ;;  %1812 = vmatpush1.bf16.msra.mxu0 %v769_v35 }
 0x3a6   : > { %v812_v34 = vrot.slane %v803_v32, %v3497_v15  ;;  %v2065_v6 = vrot.slane %v2048_v28, %v3515_v26  ;;  %v4044_v13 = vmul.f32 %v2053_v61, %v798_v62  ;;  %v816_v58 = vrot.slane %v803_v32, %v3513_v25 }
 0x3a7   : > { %4506 = vst [vmem:[#allocation16_spill] sm:$0xff] %v4027_v39  ;;  %v790_v41 = vpop.permute.xlu0 %789  ;;  %v771_v21 = vpack.c.bf16 %v767_v49, %v763_v57  ;;  %v780_v2 = vpop.permute.xlu1 %779  ;;  %v772_v18 = vpack.c.bf16 %v768_v29, %v764_v36  ;;  %v808_v57 = vrot.slane %v803_v32, %v3505_v20  ;;  %v820_v59 = vrot.slane %v803_v32, %v3515_v26 }
 0x3a8   : > { %v826_v27 = vmul.f32 %v812_v34, %v798_v62  ;;  %4507 = vst [vmem:[#allocation17_spill] sm:$0xff] %v4044_v13  ;;  %v800_v49 = vsel %vm793_vm15, %v790_v41, %v778_v7  ;;  %v2061_v62 = vrot.slane %v2048_v28, %v3513_v25  ;;  %v2057_v32 = vrot.slane %v2048_v28, %v3497_v15 }
 0x3a9   : > { %1854 = vmatprep.subr.bf16.mxu1 %v772_v18  ;;  %v825_v5 = vmul.f32 %v808_v57, %v800_v49 }
 0x3aa   : > { %1855 = vmatpush1.bf16.msra.mxu1 %v771_v21 }
 0x3ab   : > { %v786_v35 = vpop.permute.xlu0 %785  ;;  %v784_v44 = vpop.permute.xlu1 %783 }
 0x3ac   : > { %v799_v36 = vsel %vm793_vm15, %v780_v2, %v784_v44  ;;  %v796_v3 = vsel %vm793_vm15, %v782_v60, %v786_v35 }
 0x3ad   : > { %v830_v29 = vmul.f32 %v812_v34, %v799_v36  ;;  %v4048_v54 = vmul.f32 %v2053_v61, %v799_v36  ;;  %v4059_v34 = vmul.f32 %v2065_v6, %v800_v49  ;;  %v794_v61 = vsel %vm793_vm15, %v786_v35, %v790_v41 }
 0x3ae   : > { %v828_v13 = vmul.f32 %v820_v59, %v794_v61 }
 0x3af   : > { %4508 = vst [vmem:[#allocation18_spill] sm:$0xff] %v4048_v54  ;;  %v842_v18 = vpop.permute.xlu0 %841  ;;  %v792_v17 = vpop.permute.xlu1 %791  ;;  %v834_v63 = vpack.c.bf16 %v830_v29, %v826_v27  ;;  %4509 = vst [vmem:[#allocation19_spill] sm:$0xff] %v4059_v34  ;;  %v827_v29 = vmul.f32 %v816_v58, %v796_v3 }
 0x3b0   : > { %v801_v7 = vsel %vm793_vm15, %v792_v17, %v780_v2  ;;  %v4068_v2 = vmul.f32 %v2061_v62, %v794_v61 }
 0x3b1   : > { %v829_v36 = vmul.f32 %v808_v57, %v801_v7  ;;  %v4063_v21 = vmul.f32 %v2065_v6, %v801_v7  ;;  %1813 = vmatprep.subr.bf16.mxu0 %v834_v63  ;;  %v4078_v6 = vmul.f32 %v2057_v32, %v796_v3  ;;  %v2087_v7 = vld [vmem:[#allocation3 + $0x47] ss:$8 sm:$0xf] }
 0x3b2   : > { %4511 = vst [vmem:[#allocation21_spill] sm:$0xff] %v4068_v2 }
 0x3b3   : > { %4510 = vst [vmem:[#allocation20_spill] sm:$0xff] %v4063_v21  ;;  %v846_v27 = vpop.permute.xlu0 %845  ;;  %v833_v53 = vpack.c.bf16 %v829_v36, %v825_v5  ;;  %v788_v39 = vpop.permute.xlu1 %787  ;;  %v867_v5 = vld [vmem:[#allocation3 + $0x5] ss:$8 sm:$0xf] }
 0x3b4   : > { %v795_v49 = vsel %vm793_vm15, %v788_v39, %v792_v17  ;;  %v797_v41 = vsel %vm793_vm15, %v784_v44, %v788_v39  ;;  %v2092_v44 = vrot.slane %v2087_v7, %v3505_v20  ;;  %v862_v3 = vsel %vm857_vm2, %v842_v18, %v846_v27 }
 0x3b5   : > { %v831_v35 = vmul.f32 %v816_v58, %v797_v41  ;;  %v832_v63 = vmul.f32 %v820_v59, %v795_v49  ;;  %v4074_v57 = vmul.f32 %v2057_v32, %v797_v41  ;;  %v4076_v28 = vmul.f32 %v2061_v62, %v795_v49  ;;  %1814 = vmatpush1.bf16.msra.mxu0 %v833_v53 }
 0x3b6   : > { %v876_v59 = vrot.slane %v867_v5, %v3497_v15  ;;  %v2104_v49 = vrot.slane %v2087_v7, %v3515_v26  ;;  %v4093_v41 = vmul.f32 %v2092_v44, %v862_v3  ;;  %v880_v58 = vrot.slane %v867_v5, %v3513_v25  ;;  %v4550_v0 = vld [vmem:[#allocation18_spill] sm:$0xff] }
 0x3b7   : > { %4512 = vst [vmem:[#allocation22_spill] sm:$0xff] %v4076_v28  ;;  %v854_v61 = vpop.permute.xlu0 %853  ;;  %v835_v36 = vpack.c.bf16 %v831_v35, %v827_v29  ;;  %v844_v60 = vpop.permute.xlu1 %843  ;;  %v836_v39 = vpack.c.bf16 %v832_v63, %v828_v13  ;;  %v872_v29 = vrot.slane %v867_v5, %v3505_v20  ;;  %v884_v2 = vrot.slane %v867_v5, %v3515_v26 }
 0x3b8   : > { %v890_v32 = vmul.f32 %v876_v59, %v862_v3  ;;  %4513 = vst [vmem:[#allocation23_spill] sm:$0xff] %v4093_v41  ;;  %v864_v35 = vsel %vm857_vm2, %v854_v61, %v842_v18  ;;  %v2100_v3 = vrot.slane %v2087_v7, %v3513_v25  ;;  %v2096_v5 = vrot.slane %v2087_v7, %v3497_v15 }
 0x3b9   : > { %1856 = vmatprep.subr.bf16.mxu1 %v836_v39  ;;  %v889_v21 = vmul.f32 %v872_v29, %v864_v35 }
 0x3ba   : > { %1857 = vmatpush1.bf16.msra.mxu1 %v835_v36 }
 0x3bb   : > { %v850_v53 = vpop.permute.xlu0 %849  ;;  %v848_v62 = vpop.permute.xlu1 %847 }
 0x3bc   : > { %v863_v13 = vsel %vm857_vm2, %v844_v60, %v848_v62  ;;  %v860_v54 = vsel %vm857_vm2, %v846_v27, %v850_v53 }
 0x3bd   : > { %v894_v63 = vmul.f32 %v876_v59, %v863_v13  ;;  %v4097_v17 = vmul.f32 %v2092_v44, %v863_v13  ;;  %v4108_v59 = vmul.f32 %v2104_v49, %v864_v35  ;;  %v858_v44 = vsel %vm857_vm2, %v850_v53, %v854_v61 }
 0x3be   : > { %v892_v33 = vmul.f32 %v884_v2, %v858_v44 }
 0x3bf   : > { %4514 = vst [vmem:[#allocation24_spill] sm:$0xff] %v4097_v17  ;;  %v906_v39 = vpop.permute.xlu0 %905  ;;  %v856_v28 = vpop.permute.xlu1 %855  ;;  %v898_v34 = vpack.c.bf16 %v894_v63, %v890_v32  ;;  %4515 = vst [vmem:[#allocation25_spill] sm:$0xff] %v4108_v59  ;;  %v891_v63 = vmul.f32 %v880_v58, %v860_v54 }
 0x3c0   : > { %v865_v18 = vsel %vm857_vm2, %v856_v28, %v844_v60  ;;  %v4117_v60 = vmul.f32 %v2100_v3, %v858_v44 }
 0x3c1   : > { %v893_v13 = vmul.f32 %v872_v29, %v865_v18  ;;  %v4112_v36 = vmul.f32 %v2104_v49, %v865_v18  ;;  %1815 = vmatprep.subr.bf16.mxu0 %v898_v34  ;;  %v931_v49 = vld [vmem:[#allocation3 + $0x6] ss:$8 sm:$0xf]  ;;  %v4129_v18 = vld [vmem:[#allocation3 + $0x60] ss:$8 sm:$0xf] }
 0x3c2   : > { %4517 = vst [vmem:[#allocation27_spill] sm:$0xff] %v4117_v60  ;;  %v2143_v52 = vrot.slane %v4129_v18, %v3515_v26 }
 0x3c3   : > { %4516 = vst [vmem:[#allocation26_spill] sm:$0xff] %v4112_v36  ;;  %v910_v32 = vpop.permute.xlu0 %909  ;;  %v897_v41 = vpack.c.bf16 %v893_v13, %v889_v21  ;;  %v852_v17 = vpop.permute.xlu1 %851  ;;  %v4127_v21 = vmul.f32 %v2096_v5, %v860_v54  ;;  %v2131_v54 = vrot.slane %v4129_v18, %v3505_v20 }
 0x3c4   : > { %v859_v35 = vsel %vm857_vm2, %v852_v17, %v856_v28  ;;  %v861_v61 = vsel %vm857_vm2, %v848_v62, %v852_v17  ;;  %v940_v62 = vrot.slane %v931_v49, %v3497_v15 }
 0x3c5   : > { %v895_v53 = vmul.f32 %v880_v58, %v861_v61  ;;  %v896_v34 = vmul.f32 %v884_v2, %v859_v35  ;;  %v4123_v29 = vmul.f32 %v2096_v5, %v861_v61  ;;  %v4125_v7 = vmul.f32 %v2100_v3, %v859_v35  ;;  %1816 = vmatpush1.bf16.msra.mxu0 %v897_v41 }
 0x3c6   : > { %v926_v41 = vsel %vm921_vm4, %v906_v39, %v910_v32 }
 0x3c7   : > { %4518 = vst [vmem:[#allocation28_spill] sm:$0xff] %v4125_v7  ;;  %v918_v44 = vpop.permute.xlu0 %917  ;;  %v899_v13 = vpack.c.bf16 %v895_v53, %v891_v63  ;;  %v908_v17 = vpop.permute.xlu1 %907  ;;  %v900_v58 = vpack.c.bf16 %v896_v34, %v892_v33  ;;  %v936_v63 = vrot.slane %v931_v49, %v3505_v20  ;;  %v954_v35 = vmul.f32 %v940_v62, %v926_v41 }
 0x3c8   : > { %v4144_v61 = vmul.f32 %v2131_v54, %v926_v41  ;;  %v4553_v19 = vpack.c.bf16 %v4123_v29, %v4127_v21  ;;  %v2204_v29 = vld [vmem:[#allocation3 + $0x62] ss:$8 sm:$0xf] }
 0x3c9   : > { %1858 = vmatprep.subr.bf16.mxu1 %v900_v58  ;;  %v4150_v58 = vsel %vm921_vm4, %v918_v44, %v906_v39  ;;  %v4560_v21 = vld [vmem:[#allocation24_spill] sm:$0xff] }
 0x3ca   : > { %1859 = vmatpush1.bf16.msra.mxu1 %v899_v13  ;;  %4519 = vst [vmem:[#allocation29_spill] sm:$0xff] %v4144_v61  ;;  %4521 = vst [vmem:[#allocation31_spill] sm:$0xff] %v4150_v58  ;;  %v953_v41 = vmul.f32 %v936_v63, %v4150_v58 }
 0x3cb   : > { %v914_v3 = vpop.permute.xlu0 %913  ;;  %v912_v5 = vpop.permute.xlu1 %911 }
 0x3cc   : > { %v927_v33 = vsel %vm921_vm4, %v908_v17, %v912_v5  ;;  %v4164_v39 = vsel %vm921_vm4, %v914_v3, %v918_v44 }
 0x3cd   : > { %v958_v53 = vmul.f32 %v940_v62, %v927_v33  ;;  %v4146_v34 = vmul.f32 %v2131_v54, %v927_v33  ;;  %v944_v62 = vrot.slane %v931_v49, %v3513_v25  ;;  %v948_v54 = vrot.slane %v931_v49, %v3515_v26  ;;  %4522 = vst [vmem:[#allocation32_spill] sm:$0xff] %v4164_v39 }
 0x3cf   : > { %4520 = vst [vmem:[#allocation30_spill] sm:$0xff] %v4146_v34  ;;  %v970_v28 = vpop.permute.xlu0 %969  ;;  %v920_v27 = vpop.permute.xlu1 %919  ;;  %v962_v2 = vpack.c.bf16 %v958_v53, %v954_v35  ;;  %v4168_v35 = vsel %vm921_vm4, %v910_v32, %v914_v3  ;;  %v956_v44 = vmul.f32 %v948_v54, %v4164_v39  ;;  %v995_v3 = vld [vmem:[#allocation3 + $0x7] ss:$8 sm:$0xf] }
 0x3d0   : > { %v4156_v60 = vsel %vm921_vm4, %v920_v27, %v908_v17  ;;  %v1004_v34 = vrot.slane %v995_v3, %v3497_v15  ;;  %v1008_v59 = vrot.slane %v995_v3, %v3513_v25 }
 0x3d1   : > { %v957_v33 = vmul.f32 %v936_v63, %v4156_v60  ;;  %1817 = vmatprep.subr.bf16.mxu0 %v962_v2  ;;  %v955_v2 = vmul.f32 %v944_v62, %v4168_v35 }
 0x3d3   : > { %v974_v53 = vpop.permute.xlu0 %973  ;;  %v961_v17 = vpack.c.bf16 %v957_v33, %v953_v41  ;;  %v916_v13 = vpop.permute.xlu1 %915 }
 0x3d4   : > { %v4172_v7 = vsel %vm921_vm4, %v916_v13, %v920_v27  ;;  %v4176_v49 = vsel %vm921_vm4, %v912_v5, %v916_v13  ;;  %v4186_v5 = vsel %vm985_vm5, %v970_v28, %v974_v53 }
 0x3d5   : > { %4523 = vst [vmem:[#allocation33_spill] sm:$0xff] %v4172_v7  ;;  %v959_v63 = vmul.f32 %v944_v62, %v4176_v49  ;;  %v960_v32 = vmul.f32 %v948_v54, %v4172_v7  ;;  %1818 = vmatpush1.bf16.msra.mxu0 %v961_v17  ;;  %4524 = vst [vmem:[#allocation34_spill] sm:$0xff] %v4186_v5  ;;  %v1018_v17 = vmul.f32 %v1004_v34, %v4186_v5 }
 0x3d6   : > { %v1012_v5 = vrot.slane %v995_v3, %v3515_v26 }
 0x3d7   : > { %v982_v41 = vpop.permute.xlu0 %981  ;;  %v963_v33 = vpack.c.bf16 %v959_v63, %v955_v2  ;;  %v972_v27 = vpop.permute.xlu1 %971  ;;  %v964_v61 = vpack.c.bf16 %v960_v32, %v956_v44  ;;  %v1000_v2 = vrot.slane %v995_v3, %v3505_v20 }
 0x3d9   : > { %1860 = vmatprep.subr.bf16.mxu1 %v964_v61  ;;  %v4197_v61 = vsel %vm985_vm5, %v982_v41, %v970_v28 }
 0x3da   : > { %1861 = vmatpush1.bf16.msra.mxu1 %v963_v33  ;;  %4526 = vst [vmem:[#allocation36_spill] sm:$0xff] %v4197_v61  ;;  %v1017_v7 = vmul.f32 %v1000_v2, %v4197_v61 }
 0x3db   : > { %v978_v13 = vpop.permute.xlu0 %977 }
 0x3dc   : > { %v976_v62 = vpop.permute.xlu1 %975  ;;  %v4209_v28 = vsel %vm985_vm5, %v978_v13, %v982_v41 }
 0x3dd   : > { %v4190_v54 = vsel %vm985_vm5, %v972_v27, %v976_v62  ;;  %4528 = vst [vmem:[#allocation38_spill] sm:$0xff] %v4209_v28  ;;  %v1020_v41 = vmul.f32 %v1012_v5, %v4209_v28 }
 0x3de   : > { %4525 = vst [vmem:[#allocation35_spill] sm:$0xff] %v4190_v54  ;;  %v1022_v44 = vmul.f32 %v1004_v34, %v4190_v54  ;;  %v4213_v34 = vsel %vm985_vm5, %v974_v53, %v978_v13 }
 0x3df   : > { %v1034_v63 = vpop.permute.xlu0 %1033 }
 0x3e0   : > { %v984_v32 = vpop.permute.xlu1 %983  ;;  %v1026_v39 = vpack.c.bf16 %v1022_v44, %v1018_v17 }
 0x3e1   : > { %v4201_v33 = vsel %vm985_vm5, %v984_v32, %v972_v27 }
 0x3e2   : > { %4527 = vst [vmem:[#allocation37_spill] sm:$0xff] %v4201_v33  ;;  %v1021_v36 = vmul.f32 %v1000_v2, %v4201_v33  ;;  %1819 = vmatprep.subr.bf16.mxu0 %v1026_v39  ;;  %v1019_v39 = vmul.f32 %v1008_v59, %v4213_v34 }
 0x3e3   : > { %v1038_v44 = vpop.permute.xlu0 %1037 }
 0x3e4   : > { %v1025_v17 = vpack.c.bf16 %v1021_v36, %v1017_v7  ;;  %v980_v27 = vpop.permute.xlu1 %979  ;;  %v1059_v36 = vld [vmem:[#allocation3 + $0x20] ss:$8 sm:$0xf] }
 0x3e5   : > { %v4217_v61 = vsel %vm985_vm5, %v980_v27, %v984_v32  ;;  %v4221_v3 = vsel %vm985_vm5, %v976_v62, %v980_v27  ;;  %v1068_v33 = vrot.slane %v1059_v36, %v3497_v15  ;;  %v4231_v62 = vsel %vm1049_vm6, %v1034_v63, %v1038_v44 }
 0x3e6   : > { %4529 = vst [vmem:[#allocation39_spill] sm:$0xff] %v4217_v61  ;;  %v1023_v2 = vmul.f32 %v1008_v59, %v4221_v3  ;;  %v1024_v53 = vmul.f32 %v1012_v5, %v4217_v61  ;;  %1820 = vmatpush1.bf16.msra.mxu0 %v1025_v17  ;;  %4530 = vst [vmem:[#allocation40_spill] sm:$0xff] %v4231_v62  ;;  %v1064_v17 = vrot.slane %v1059_v36, %v3505_v20 }
 0x3e7   : > { %v1046_v54 = vpop.permute.xlu0 %1045  ;;  %v1082_v5 = vmul.f32 %v1068_v33, %v4231_v62  ;;  %v1072_v61 = vrot.slane %v1059_v36, %v3513_v25  ;;  %v1076_v62 = vrot.slane %v1059_v36, %v3515_v26 }
 0x3e8   : > { %v1027_v7 = vpack.c.bf16 %v1023_v2, %v1019_v39  ;;  %v1036_v13 = vpop.permute.xlu1 %1035  ;;  %v1028_v32 = vpack.c.bf16 %v1024_v53, %v1020_v41  ;;  %v4242_v41 = vsel %vm1049_vm6, %v1046_v54, %v1034_v63 }
 0x3e9   : > { %4531 = vst [vmem:[#allocation41_spill] sm:$0xff] %v4242_v41  ;;  %v1081_v28 = vmul.f32 %v1064_v17, %v4242_v41  ;;  %v3058_v41 = vld [vmem:[#allocation6] ss:$8 sps:$4 sm:$0xff]  }
 0x3ea   : > { %1862 = vmatprep.subr.bf16.mxu1 %v1028_v32 }
 0x3eb   : > { %1863 = vmatpush1.bf16.msra.mxu1 %v1027_v7  ;;  %v1042_v2 = vpop.permute.xlu0 %1041 }
 0x3ec   : > { %v1040_v27 = vpop.permute.xlu1 %1039  ;;  %v4254_v63 = vsel %vm1049_vm6, %v1042_v2, %v1046_v54 }
 0x3ed   : > { %v4235_v59 = vsel %vm1049_vm6, %v1036_v13, %v1040_v27 }
 0x3ee   : > { %v1086_v39 = vmul.f32 %v1068_v33, %v4235_v59  ;;  %v4258_v33 = vsel %vm1049_vm6, %v1038_v44, %v1042_v2  ;;  %v3059_v2 = vld [vmem:[#allocation6 + $0x24] ss:$8 sps:$4 sm:$0xff]  }
 0x3f0   : > { %v1048_v53 = vpop.permute.xlu1 %1047  ;;  %v1090_v32 = vpack.c.bf16 %v1086_v39, %v1082_v5 }
 0x3f1   : > { %v4246_v7 = vsel %vm1049_vm6, %v1048_v53, %v1036_v13 }
 0x3f2   : > { %4532 = vst [vmem:[#allocation42_spill] sm:$0xff] %v4246_v7  ;;  %v1085_v58 = vmul.f32 %v1064_v17, %v4246_v7  ;;  %1821 = vmatprep.subr.bf16.mxu0 %v1090_v32  ;;  %v1083_v17 = vmul.f32 %v1072_v61, %v4258_v33  ;;  %v1084_v32 = vmul.f32 %v1076_v62, %v4254_v63 }
 0x3f4   : > { %v1089_v5 = vpack.c.bf16 %v1085_v58, %v1081_v28  ;;  %v1044_v13 = vpop.permute.xlu1 %1043  ;;  %v4533_v58 = vpack.c.bf16 %v3866_v42, %v3872_v45  ;;  %v4537_v42 = vpack.c.bf16 %v3897_v10, %v3893_v4  ;;  %v4540_v45 = vpack.c.bf16 %v3914_v31, %v3906_v16 }
 0x3f5   : > { %v4262_v39 = vsel %vm1049_vm6, %v1044_v13, %v1048_v53  ;;  %v1053_v36 = vsel %vm1049_vm6, %v1040_v27, %v1044_v13  ;;  %v4543_v4 = vpack.c.bf16 %v3929_v46, %v3921_v40  ;;  %v2135_v10 = vrot.slane %v4129_v18, %v3497_v15  ;;  %v4548_v40 = vld [vmem:[#allocation14_spill] sm:$0xff]  ;;  %v4561_v27 = vld [vmem:[#allocation23_spill] sm:$0xff] }
 0x3f6   : > { %v1087_v54 = vmul.f32 %v1072_v61, %v1053_v36  ;;  %v1088_v7 = vmul.f32 %v1076_v62, %v4262_v39  ;;  %1822 = vmatpush1.bf16.msra.mxu0 %v1089_v5  ;;  %v4535_v61 = vpack.c.bf16 %v3927_v48, %v3931_v50  ;;  %v4536_v62 = vpack.c.bf16 %v3851_v30, %v3841_v23  ;;  %v2165_v50 = vld [vmem:[#allocation3 + $0x61] ss:$8 sm:$0xf] }
 0x3f7   : > { %2293 = vmatprep.subr.bf16.mxu0 %v4533_v58  ;;  %v4541_v23 = vpack.c.bf16 %v3950_v8, %v3946_v22  ;;  %v4542_v30 = vpack.c.bf16 %v4025_v11, %v4029_v24  ;;  %v4546_v16 = vpack.c.bf16 %v4074_v57, %v4078_v6  ;;  %v4547_v31 = vpack.c.bf16 %v3978_v51, %v3970_v55  ;;  %v4551_v22 = vld [vmem:[#allocation17_spill] sm:$0xff]  ;;  %v4554_v55 = vld [vmem:[#allocation16_spill] sm:$0xff]  ;;  %v4555_v51 = vld [vmem:[#allocation15_spill] sm:$0xff] }
 0x3f8   : > { %v1091_v28 = vpack.c.bf16 %v1087_v54, %v1083_v17  ;;  %v1092_v44 = vpack.c.bf16 %v1088_v7, %v1084_v32  ;;  %v4549_v48 = vpack.c.bf16 %v4014_v47, %v4548_v40  ;;  %v2153_v46 = vmul.f32 %v2135_v10, %v4176_v49  ;;  %v4557_v47 = vld [vmem:[#allocation20_spill] sm:$0xff]  ;;  %v4558_v11 = vld [vmem:[#allocation19_spill] sm:$0xff]  ;;  %v4563_v13 = vld [vmem:[#allocation22_spill] sm:$0xff] }
 0x3f9   : > { %1838 = vmatmul.mubr.bf16.vlgmr.msra.gmra.mrb[4].mxu0 %v3058_v41  ;;  %v4552_v8 = vpack.c.bf16 %v4550_v0, %v4551_v22  ;;  %v2149_v9 = vmul.f32 %v2135_v10, %v4168_v35  ;;  %v2174_v56 = vrot.slane %v2165_v50, %v3497_v15  ;;  %v4556_v38 = vpack.c.bf16 %v4554_v55, %v4555_v51  ;;  %v4567_v58 = vld [vmem:[#allocation35_spill] sm:$0xff] }
 0x3fa   : > { %1864 = vmatprep.subr.bf16.mxu1 %v1092_v44  ;;  %2294 = vmatpush1.bf16.msra.mxu0 %v4534_v14  ;;  %v4559_v24 = vpack.c.bf16 %v4557_v47, %v4558_v11  ;;  %v2155_v35 = vmul.f32 %v2143_v52, %v4156_v60  ;;  %v2170_v49 = vrot.slane %v2165_v50, %v3505_v20  ;;  %v4566_v60 = vld [vmem:[#allocation31_spill] sm:$0xff]  ;;  %v4568_v44 = vld [vmem:[#allocation26_spill] sm:$0xff] }
 0x3fb   : > { %1865 = vmatpush1.bf16.msra.mxu1 %v1091_v28  ;;  %2295 = vmatprep.subr.bf16.mxu0 %v4535_v61  ;;  %v2192_v57 = vmul.f32 %v2174_v56, %v4221_v3  ;;  %v2157_v6 = vpack.c.bf16 %v2153_v46, %v2149_v9  ;;  %v2139_v53 = vrot.slane %v4129_v18, %v3513_v25  ;;  %v4564_v3 = vld [vmem:[#allocation21_spill] sm:$0xff]  ;;  %v4579_v40 = vld [vmem:[#allocation27_spill] sm:$0xff]  ;;  %v4581_v46 = vld [vmem:[#allocation36_spill] sm:$0xff] }
 0x3fc   : > { %2336 = vmatprep.subr.bf16.mxu1 %v4536_v62  ;;  %2928 = vmatprep.mubr.msk.bf16.mxu0 %vm1703_vm3, %v3059_v2  ;;  %v2188_v7 = vmul.f32 %v2174_v56, %v4213_v34  ;;  %v2213_v5 = vrot.slane %v2204_v29, %v3497_v15  ;;  %v4565_v17 = vpack.c.bf16 %v4563_v13, %v4564_v3  ;;  %v4571_v18 = vld [vmem:[#allocation33_spill] sm:$0xff]  ;;  %v4572_v15 = vld [vmem:[#allocation34_spill] sm:$0xff]  ;;  %v4582_v56 = vld [vmem:[#allocation39_spill] sm:$0xff] }
 0x3fd   : > { %v2151_v32 = vmul.f32 %v2143_v52, %v4566_v60  ;;  %v2182_v54 = vrot.slane %v2165_v50, %v3515_v26  ;;  %v2191_v28 = vmul.f32 %v2170_v49, %v4567_v58  ;;  %v2154_v61 = vmul.f32 %v2139_v53, %v4571_v18  ;;  %v4585_v47 = vld [vmem:[#allocation38_spill] sm:$0xff] }
 0x3fe   : > { %2296 = vmatpush1.bf16.msra.mxu0 %v4537_v42  ;;  %1881 = vmatmul.mubr.bf16.vlgmr.msra.gmra.mrb[4].mxu1 %v3058_v41  ;;  %v4562_v41 = vpack.c.bf16 %v4560_v21, %v4561_v27  ;;  %v2231_v34 = vmul.f32 %v2213_v5, %v1053_v36  ;;  %v2196_v62 = vpack.c.bf16 %v2192_v57, %v2188_v7  ;;  %v4578_v36 = vld [vmem:[#allocation28_spill] sm:$0xff] }
 0x3ff   : > { %2297 = vmatprep.subr.bf16.mxu0 %v4538_v1  ;;  %2337 = vmatpush1.bf16.msra.mxu1 %v4539_v12  ;;  %v2187_v42 = vmul.f32 %v2170_v49, %v4572_v15  ;;  %v4573_v1 = vld [vmem:[#allocation37_spill] sm:$0xff]  ;;  %v2190_v0 = vmul.f32 %v2182_v54, %v4581_v46  ;;  %v3061_v49 = vld [vmem:[#allocation6 + $0x20] ss:$8 sps:$4 sm:$0xff]  }
 0x400   : > { %2338 = vmatprep.subr.bf16.mxu1 %v4540_v45  ;;  %2929 = vmatprep.mubr.msk.bf16.mxu1 %vm1703_vm3, %v3059_v2  ;;  %v4569_v2 = vld [vmem:[#allocation25_spill] sm:$0xff]  ;;  %v2194_v12 = vmul.f32 %v2182_v54, %v4573_v1  ;;  %v2209_v45 = vrot.slane %v2204_v29, %v3505_v20  ;;  %v2221_v20 = vrot.slane %v2204_v29, %v3515_v26 }
 0x401   : > { %v4570_v14 = vpack.c.bf16 %v4568_v44, %v4569_v2  ;;  %v2195_v22 = vpack.c.bf16 %v2191_v28, %v2187_v42  ;;  %v4586_v26 = vld [vmem:[#allocation41_spill] sm:$0xff] }
 0x402   : > { %2298 = vmatpush1.bf16.msra.mxu0 %v4541_v23  ;;  %v4574_v23 = vld [vmem:[#allocation30_spill] sm:$0xff]  ;;  %v2198_v52 = vpack.c.bf16 %v2194_v12, %v2190_v0  ;;  %v2229_v57 = vmul.f32 %v2221_v20, %v4586_v26 }
 0x403   : > { %2299 = vmatprep.subr.bf16.mxu0 %v4542_v30  ;;  %2339 = vmatpush1.bf16.msra.mxu1 %v4543_v4  ;;  %v4575_v30 = vld [vmem:[#allocation29_spill] sm:$0xff] }
 0x404   : > { %2340 = vmatprep.subr.bf16.mxu1 %v4544_v37  ;;  %v4576_v4 = vpack.c.bf16 %v4574_v23, %v4575_v30  ;;  %v2159_v37 = vpack.c.bf16 %v2155_v35, %v2151_v32 }
 0x406   : > { %2300 = vmatpush1.bf16.msra.mxu0 %v4545_v43  ;;  %v4577_v43 = vld [vmem:[#allocation32_spill] sm:$0xff] }
 0x407   : > { %2301 = vmatprep.subr.bf16.mxu0 %v4546_v16  ;;  %2341 = vmatpush1.bf16.msra.mxu1 %v4547_v31  ;;  %v2150_v10 = vmul.f32 %v2139_v53, %v4577_v43  ;;  %v2178_v16 = vrot.slane %v2165_v50, %v3513_v25  ;;  %v2227_v31 = vmul.f32 %v2213_v5, %v4258_v33  ;;  %v4583_v50 = vld [vmem:[#allocation40_spill] sm:$0xff]  ;;  %v4584_v33 = vld [vmem:[#allocation42_spill] sm:$0xff]  ;;  %v4587_v53 = vmov 0.0  }
 0x408   : > { %2342 = vmatprep.subr.bf16.mxu1 %v4549_v48  ;;  %v4580_v48 = vpack.c.bf16 %v4578_v36, %v4579_v40  ;;  %v2226_v51 = vmul.f32 %v2209_v45, %v4583_v50 }
 0x409   : > { %v2158_v9 = vpack.c.bf16 %v2154_v61, %v2150_v10  ;;  %v2235_v55 = vpack.c.bf16 %v2231_v34, %v2227_v31  ;;  %v2189_v11 = vmul.f32 %v2178_v16, %v4585_v47 }
 0x40a   : > { %2302 = vmatpush1.bf16.msra.mxu0 %v4552_v8  ;;  %v2230_v8 = vmul.f32 %v2209_v45, %v4235_v59 }
 0x40b   : > { %2303 = vmatprep.subr.bf16.mxu0 %v4553_v19  ;;  %2343 = vmatpush1.bf16.msra.mxu1 %v4556_v38  ;;  %v2193_v19 = vmul.f32 %v2178_v16, %v4582_v56  ;;  %v2233_v38 = vmul.f32 %v2221_v20, %v4584_v33 }
 0x40c   : > { %2344 = vmatprep.subr.bf16.mxu1 %v4559_v24  ;;  %v2217_v24 = vrot.slane %v2204_v29, %v3513_v25  ;;  %v2234_v59 = vpack.c.bf16 %v2230_v8, %v2226_v51 }
 0x40d   : > { %v2237_v21 = vpack.c.bf16 %v2233_v38, %v2229_v57 }
 0x40e   : > { %2304 = vmatpush1.bf16.msra.mxu0 %v4562_v41  ;;  %v2232_v35 = vmul.f32 %v2217_v24, %v4262_v39  ;;  %v2228_v27 = vmul.f32 %v2217_v24, %v4254_v63 }
 0x40f   : > { %2305 = vmatprep.subr.bf16.mxu0 %v2157_v6  ;;  %2345 = vmatpush1.bf16.msra.mxu1 %v4565_v17  ;;  %v2197_v6 = vpack.c.bf16 %v2193_v19, %v2189_v11 }
 0x410   : > { %2346 = vmatprep.subr.bf16.mxu1 %v4570_v14  ;;  %v2236_v41 = vpack.c.bf16 %v2232_v35, %v2228_v27 }
 0x412   : > { %2306 = vmatpush1.bf16.msra.mxu0 %v4576_v4 }
 0x413   : > { %2307 = vmatprep.subr.bf16.mxu0 %v2196_v62  ;;  %2347 = vmatpush1.bf16.msra.mxu1 %v4580_v48 }
 0x414   : > { %2348 = vmatprep.subr.bf16.mxu1 %v2159_v37 }
 0x416   : > { %2308 = vmatpush1.bf16.msra.mxu0 %v2195_v22 }
 0x417   : > { %2309 = vmatprep.subr.bf16.mxu0 %v2235_v55  ;;  %2349 = vmatpush1.bf16.msra.mxu1 %v2158_v9 }
 0x418   : > { %2350 = vmatprep.subr.bf16.mxu1 %v2198_v52 }
 0x41a   : > { %2310 = vmatpush1.bf16.msra.mxu0 %v2234_v59 }
 0x41b   : > { %2351 = vmatpush1.bf16.msra.mxu1 %v2197_v6 }
 0x41c   : > { %2352 = vmatprep.subr.bf16.mxu1 %v2237_v21 }
 0x41d   : > { %2326 = vmatmul.mubr.bf16.vlgmr.msra.gmra.mrb[4].mxu0 %v3061_v49 }
 0x41e   : > { %2515 = vmatprep.mubr.f32.mxu0 %v4587_v53 }
 0x41f   : > { %2353 = vmatpush1.bf16.msra.mxu1 %v2236_v41 }
 0x422   : > { %2369 = vmatmul.mubr.bf16.vlgmr.msra.gmra.mrb[4].mxu1 %v3061_v49 }
 0x423   : > { %2586 = vmatprep.mubr.f32.mxu1 %v4587_v53 }
 0x4f0   : > { %v2327_v25 = vpop.f32.mrb[4].mxu0 }
 0x4f1   : > { %v2329_v29 = vpop.f32.mrb[5].mxu0 }
 0x4f2   : > { %v2387_v7 = vadd.f32 %v2329_v29, %v2327_v25  ;;  %v2331_v5 = vpop.f32.mrb[6].mxu0 }
 0x4f3   : > { %v2333_v39 = vpop.f32.mrb[7].mxu0 }
 0x4f4   : > { %v2392_v13 = vadd.f32 %v2333_v39, %v2331_v5 }
 0x4f5   : > { %v2370_v3 = vpop.f32.mrb[4].mxu1 }
 0x4f6   : > { %v2388_v17 = vadd.f32 %v2387_v7, %v2370_v3  ;;  %v2372_v60 = vpop.f32.mrb[5].mxu1 }
 0x4f7   : > { %v2374_v63 = vpop.f32.mrb[6].mxu1 }
 0x4f8   : > { %v2389_v32 = vadd.f32 %v2388_v17, %v2372_v60  ;;  %v2393_v54 = vadd.f32 %v2392_v13, %v2374_v63  ;;  %v2376_v58 = vpop.f32.mrb[7].mxu1  ;;  %v2447_v13 = vld [vmem:[%s4455_s5] sm:$0xff]  ;;  %v4589_v17 = vld [vmem:[#allocation13_spill] sm:$0xff] }
 0x4fa   : > { %v2394_v28 = vadd.f32 %v2393_v54, %v2376_v58  ;;  %2390 = vadd.xlane.f32.xlu0 %v2389_v32  ;;  %v3075_v32 = vld [vmem:[%s3391_s17 + $0x8] sm:$0xff] }
 0x4fc   : > { %2395 = vadd.xlane.f32.xlu1 %v2394_v28 }
 0x587   : > { %v2391_v44 = vpop.xlane.xlu0 %2390 }
 0x588   : > { %v2397_v2 = vmul.f32 0.001953125, %v2391_v44 }
 0x589   : > { %v2396_v14 = vpop.xlane.xlu1 %2395 }
 0x58a   : > { %v2399_v18 = vsub.f32 %v2327_v25, %v2397_v2  ;;  %v2400_v61 = vsub.f32 %v2329_v29, %v2397_v2  ;;  %v2398_v34 = vmul.f32 0.001953125, %v2396_v14  ;;  %v2401_v62 = vsub.f32 %v2370_v3, %v2397_v2  ;;  %v4588_v3 = vld [vmem:[#allocation12_spill] sm:$0xff] }
 0x58b   : > { %v2402_v45 = vsub.f32 %v2372_v60, %v2397_v2  ;;  %v3074_v60 = vld [vmem:[%s3391_s17] sm:$0xff]  ;;  %s272_s17 = sand.u32 1, %s3194_s22  }
 0x58c   : > { %v2403_v15 = vsub.f32 %v2331_v5, %v2398_v34  ;;  %v2404_v42 = vsub.f32 %v2333_v39, %v2398_v34  ;;  %v2407_v1 = vmul.f32 %v2399_v18, %v2399_v18  ;;  %v2405_v12 = vsub.f32 %v2374_v63, %v2398_v34  ;;  %v2619_v63 = vld [vmem:[%s4452_s2] sm:$0xff]  ;;  %s2907_s12 = sshll.u32 %s272_s17, 5  ;;  %s2804_s25 = scalar_lea.sflag [#allocation5], %s272_s17 }
 0x58d   : > { %v2408_v23 = vmul.f32 %v2400_v61, %v2400_v61  ;;  %v2409_v37 = vmul.f32 %v2401_v62, %v2401_v62  ;;  %v2410_v16 = vmul.f32 %v2402_v45, %v2402_v45  ;;  %v2406_v36 = vsub.f32 %v2376_v58, %v2398_v34  ;;  %s274_s16 = scalar_lea.vmem [#allocation8], %s2907_s12 }
 0x58e   : > { %v2411_v30 = vmul.f32 %v2403_v15, %v2403_v15  ;;  %v2412_v4 = vmul.f32 %v2404_v42, %v2404_v42  ;;  %v2413_v40 = vmul.f32 %v2405_v12, %v2405_v12  ;;  %s2818_s18 = sshll.u32 %s274_s16, 4  ;;  %s4410_s18 = int_to_ptr.vmem [resolvable:$true] %s2818_s18 }
 0x58f   : > { %v2415_v43 = vadd.f32 %v2408_v23, %v2407_v1  ;;  %v2414_v0 = vmul.f32 %v2406_v36, %v2406_v36  ;;  %s3132_s28 = scalar_lea.vmem %s4410_s18, 512  ;;  %p3139_p4 = scmp.lt.s32.totalorder %s4410_s18, %s3137_s29 }
 0x590   : > { %v2420_v10 = vadd.f32 %v2412_v4, %v2411_v30  ;;  %p3133_p12 = scmp.ne.s32.totalorder %s4410_s18, %s3132_s28  ;;  %p3140_p7 = scmp.lt.s32.totalorder %s3138_s10, %s3132_s28 }
 0x591   : > { %v2416_v31 = vadd.f32 %v2415_v43, %v2409_v37 }
 0x592   : > { %v2421_v46 = vadd.f32 %v2420_v10, %v2413_v40  ;;  %p3134_p2 = pnand %p3133_p12, %p4590_p1  ;;  %p3141_p8 = por %p3140_p7, %p3139_p4 }
 0x593   : > { %v2417_v48 = vadd.f32 %v2416_v31, %v2410_v16 }
 0x594   : > { %v2422_v22 = vadd.f32 %v2421_v46, %v2414_v0  ;;  %p3135_p3 = pneg %p3134_p2 }
 0x595   : > { %2418 = vadd.xlane.f32.xlu0 %v2417_v48 }
 0x596   : > { %p3142_p11 = pnand %p3141_p8, %p3135_p3 }
 0x599   : > { %2423 = vadd.xlane.f32.xlu0 %v2422_v22 }
 0x622   : > { %v2419_v20 = vpop.xlane.xlu0 %2418 }
 0x623   : > { %v2425_v8 = vmul.f32 0.001953125, %v2419_v20 }
 0x625   : > { %v2427_v9 = vadd.f32 1e-05, %v2425_v8 }
 0x626   : > { %v2424_v56 = vpop.xlane.xlu0 %2423 }
 0x627   : > { %3066 = vrsqrt.f32 %v2427_v9  ;;  %v2426_v19 = vmul.f32 0.001953125, %v2424_v56 }
 0x629   : > { %v2428_v55 = vadd.f32 1e-05, %v2426_v19 }
 0x62b   : > { %3068 = vrsqrt.f32 %v2428_v55 }
 0x631   : > { %v3067_v50 = vpop.eup %3066 }
 0x632   : > { %v2432_v51 = vmul.f32 %v3067_v50, %v2400_v61  ;;  %v2434_v33 = vmul.f32 %v3067_v50, %v2402_v45  ;;  %v2431_v38 = vmul.f32 %v3067_v50, %v2399_v18  ;;  %v2433_v52 = vmul.f32 %v3067_v50, %v2401_v62 }
 0x634   : > { %v2440_v59 = vmax.f32 %v2432_v51, 0.0  ;;  %v2442_v6 = vmax.f32 %v2434_v33, 0.0  ;;  %v2439_v35 = vmax.f32 %v2431_v38, 0.0  ;;  %v2441_v49 = vmax.f32 %v2433_v52, 0.0 }
 0x635   : > { %v3069_v47 = vpop.eup %3068 }
 0x636   : > { %v2436_v11 = vmul.f32 %v3069_v47, %v2404_v42  ;;  %v2438_v24 = vmul.f32 %v3069_v47, %v2406_v36  ;;  %v2435_v26 = vmul.f32 %v3069_v47, %v2403_v15  ;;  %v2437_v57 = vmul.f32 %v3069_v47, %v2405_v12 }
 0x638   : > { %v2444_v21 = vmax.f32 %v2436_v11, 0.0  ;;  %v2446_v27 = vmax.f32 %v2438_v24, 0.0  ;;  %v2443_v41 = vmax.f32 %v2435_v26, 0.0  ;;  %v2445_v25 = vmax.f32 %v2437_v57, 0.0 }
 0x63a   : > { %v2945_v29 = vpack.c.bf16 %v2444_v21, %v2440_v59  ;;  %v2949_v7 = vpack.c.bf16 %v2446_v27, %v2442_v6  ;;  %v2947_v5 = vpack.c.bf16 %v2443_v41, %v2439_v35  ;;  %v2951_v39 = vpack.c.bf16 %v2445_v25, %v2441_v49 }
 0x63c   : > { %2946 = vmatprep.subr.bf16.mxu0 %v2945_v29  ;;  %2950 = vmatprep.subr.bf16.mxu1 %v2949_v7 }
 0x63d   : > { %2948 = vmatpush1.bf16.msra.mxu0 %v2947_v5  ;;  %2952 = vmatpush1.bf16.msra.mxu1 %v2951_v39 }
 0x63e   : > { %2932 = vmatprep.subr.msk.mxu0 %vm296_vm0, %v4588_v3  ;;  %2935 = vmatprep.subr.msk.mxu1 %vm296_vm0, %v4589_v17 }
 0x640   : > { %2930 = vmatmul.mubr.msk.f32.vlgmr.msra.gmra.mrb[8].mxu0 %vm1703_vm3, %v2447_v13  ;;  %2931 = vmatmul.mubr.msk.f32.vlgmr.msra.gmra.mrb[8].mxu1 %vm1703_vm3, %v2447_v13 }
 0x641   : > { %2933 = vmatpush1.msk.msra.mxu0 %vm296_vm0, %v3074_v60  ;;  %2687 = vmatprep.mubr.f32.mxu0 %v4587_v53 }
 0x642   : > { %2936 = vmatpush1.msk.msra.mxu1 %vm296_vm0, %v3075_v32  ;;  %2758 = vmatprep.mubr.f32.mxu1 %v4587_v53 }
 0x644   : > { %2934 = vmatmul.mubr.msk.f32.vlgmr.msra.gmra.mrb[10].mxu0 %vm289_vm1, %v2619_v63  ;;  %2937 = vmatmul.mubr.msk.f32.vlgmr.msra.gmra.mrb[10].mxu1 %vm289_vm1, %v2619_v63 }
 0x713   : > { %v2517_v54 = vpop.f32.mrb[8].mxu0  ;;  %v2588_v58 = vpop.f32.mrb[8].mxu1 }
 0x714   : > { %v2519_v28 = vpop.f32.mrb[9].mxu0  ;;  %v2590_v44 = vpop.f32.mrb[9].mxu1 }
 0x715   : > { %v2593_v2 = vadd.f32 %v2519_v28, %v2517_v54 }
 0x717   : > { %v2594_v14 = vadd.f32 %v2593_v2, %v2588_v58  ;;  %v2689_v18 = vpop.f32.mrb[10].mxu0  ;;  %v2760_v61 = vpop.f32.mrb[10].mxu1 }
 0x718   : > { %v2691_v34 = vpop.f32.mrb[11].mxu0  ;;  %v2762_v62 = vpop.f32.mrb[11].mxu1 }
 0x719   : > { %v2595_v15 = vadd.f32 %v2594_v14, %v2590_v44  ;;  %v2765_v42 = vadd.f32 %v2691_v34, %v2689_v18 }
 0x71b   : > { %v2766_v1 = vadd.f32 %v2765_v42, %v2760_v61  ;;  %2596 = vadd.xlane.f32.xlu0 %v2595_v15 }
 0x71d   : > { %v2767_v12 = vadd.f32 %v2766_v1, %v2762_v62 }
 0x71f   : > { %2768 = vadd.xlane.f32.xlu1 %v2767_v12 }
 0x7a8   : > { %v2597_v53 = vpop.xlane.xlu0 %2596 }
 0x7a9   : > { %v2598_v45 = vmul.f32 0.001953125, %v2597_v53 }
 0x7ab   : > { %v2599_v23 = vsub.f32 %v2517_v54, %v2598_v45  ;;  %v2600_v30 = vsub.f32 %v2519_v28, %v2598_v45  ;;  %v2601_v4 = vsub.f32 %v2588_v58, %v2598_v45  ;;  %v2602_v43 = vsub.f32 %v2590_v44, %v2598_v45 }
 0x7ac   : > { %v2769_v37 = vpop.xlane.xlu1 %2768 }
 0x7ad   : > { %v2770_v10 = vmul.f32 0.001953125, %v2769_v37  ;;  %v2603_v16 = vmul.f32 %v2599_v23, %v2599_v23  ;;  %v2604_v31 = vmul.f32 %v2600_v30, %v2600_v30  ;;  %v2605_v36 = vmul.f32 %v2601_v4, %v2601_v4 }
 0x7ae   : > { %v2606_v22 = vmul.f32 %v2602_v43, %v2602_v43 }
 0x7af   : > { %v2771_v40 = vsub.f32 %v2689_v18, %v2770_v10  ;;  %v2772_v48 = vsub.f32 %v2691_v34, %v2770_v10  ;;  %v2773_v46 = vsub.f32 %v2760_v61, %v2770_v10  ;;  %v2607_v0 = vadd.f32 %v2604_v31, %v2603_v16 }
 0x7b0   : > { %v2774_v8 = vsub.f32 %v2762_v62, %v2770_v10 }
 0x7b1   : > { %v2608_v20 = vadd.f32 %v2607_v0, %v2605_v36  ;;  %v2775_v9 = vmul.f32 %v2771_v40, %v2771_v40  ;;  %v2776_v56 = vmul.f32 %v2772_v48, %v2772_v48  ;;  %v2777_v55 = vmul.f32 %v2773_v46, %v2773_v46 }
 0x7b2   : > { %v2778_v51 = vmul.f32 %v2774_v8, %v2774_v8 }
 0x7b3   : > { %v2609_v19 = vadd.f32 %v2608_v20, %v2606_v22  ;;  %v2779_v50 = vadd.f32 %v2776_v56, %v2775_v9 }
 0x7b5   : > { %2610 = vadd.xlane.f32.xlu0 %v2609_v19  ;;  %v2780_v33 = vadd.f32 %v2779_v50, %v2777_v55 }
 0x7b7   : > { %v2781_v38 = vadd.f32 %v2780_v33, %v2778_v51 }
 0x7b9   : > { %2782 = vadd.xlane.f32.xlu1 %v2781_v38 }
 0x842   : > { %v2611_v52 = vpop.xlane.xlu0 %2610 }
 0x843   : > { %v2612_v47 = vmul.f32 0.001953125, %v2611_v52 }
 0x845   : > { %v2613_v11 = vadd.f32 1e-05, %v2612_v47 }
 0x846   : > { %v2783_v24 = vpop.xlane.xlu1 %2782 }
 0x847   : > { %v2784_v26 = vmul.f32 0.001953125, %v2783_v24  ;;  %3070 = vrsqrt.f32 %v2613_v11 }
 0x849   : > { %v2785_v57 = vadd.f32 1e-05, %v2784_v26 }
 0x84b   : > { %3072 = vrsqrt.f32 %v2785_v57 }
 0x851   : > { %v3071_v59 = vpop.eup %3070 }
 0x852   : > { %v2615_v35 = vmul.f32 %v3071_v59, %v2599_v23  ;;  %v2616_v49 = vmul.f32 %v3071_v59, %v2600_v30  ;;  %v2617_v21 = vmul.f32 %v3071_v59, %v2601_v4  ;;  %v2618_v27 = vmul.f32 %v3071_v59, %v2602_v43 }
 0x855   : > { %v3073_v6 = vpop.eup %3072 }
 0x856   : > { %v2787_v41 = vmul.f32 %v3073_v6, %v2771_v40  ;;  %v2788_v25 = vmul.f32 %v3073_v6, %v2772_v48  ;;  %v2789_v29 = vmul.f32 %v3073_v6, %v2773_v46  ;;  %v2790_v7 = vmul.f32 %v3073_v6, %v2774_v8 }
 0x858   : > { %v2791_v5 = vadd.f32 %v2787_v41, %v2615_v35  ;;  %v2792_v39 = vadd.f32 %v2788_v25, %v2616_v49  ;;  %v2793_v13 = vadd.f32 %v2789_v29, %v2617_v21  ;;  %v2794_v3 = vadd.f32 %v2790_v7, %v2618_v27 }
 0x85a   : > { %v2795_v17 = vmax.f32 %v2791_v5, 0.0  ;;  %v2796_v60 = vmax.f32 %v2792_v39, 0.0  ;;  %v2797_v63 = vmax.f32 %v2793_v13, 0.0  ;;  %v2798_v32 = vmax.f32 %v2794_v3, 0.0 }
 0x85c   : > { %2799 = vst [vmem:[%s274_s16] sm:$0xff] %v2795_v17  ;;  %2800 = vst [vmem:[%s274_s16 + $0x8] sm:$0xff] %v2796_v60 }
 0x85d   : > { %2801 = vst [vmem:[%s274_s16 + $0x10] sm:$0xff] %v2797_v63  ;;  %2802 = vst [vmem:[%s274_s16 + $0x18] sm:$0xff] %v2798_v32 }
 0x85e   : > { %3145 = shalt.err (!%p3142_p11)
}
 0x85f   : > { %s3146_s13 = scalar_lea.hbm %s4408_s26, 512  ;;  %s3150_s17 = scalar_lea.hbm %s4456_s6, 1024 }
 0x860   : > { %p3147_p13 = scmp.ne.s32.totalorder %s4408_s26, %s3146_s13  ;;  %p3151_p6 = scmp.lt.u32.totalorder %s4408_s26, %s4456_s6 }
 0x861   : > { %p3152_p9 = scmp.lt.u32.totalorder %s3150_s17, %s3146_s13  ;;  %p3154_p12 = scmp.lt.u32.totalorder %s3146_s13, %s4408_s26 }
 0x862   : > { %p3148_p0 = pnand %p3147_p13, %p4590_p1 }
 0x863   : > { %p3153_p10 = por %p3152_p9, %p3151_p6 }
 0x864   : > { %p3149_p5 = pneg %p3148_p0 }
 0x865   : > { %p3155_p2 = por %p3154_p12, %p3153_p10 }
 0x867   : > { %p3156_p3 = pnand %p3155_p2, %p3149_p5 }
 0x869   : > { %3159 = shalt.err (!%p3156_p3)
}
 0x86a   : > { %2977 = dma.vmem_to_hbm [thread:$0]  (%p4590_p1), %s4410_s18, 512, %s4408_s26, %s2804_s25  }
 0x86b PF: > { %p2994_p4 = scmp.ge.s32.totalorder %s3202_s24, 2  ;;  %s2830_s16 = sand.u32 1, %s3190_s21  }
 0x86c   : > { %p4591_p7 = scmp.ne.s32.totalorder %s4494_s8, 0  ;;  %s2831_s19 = scalar_lea.sflag [#allocation5], %s2830_s16 }
 0x86e   : > { %p2987_p8 = pnand %p2994_p4, %p4591_p7 }
 0x870   : > { %3185 = dma.done.wait (!%p2987_p8), %s2831_s19, 512  }
 0x871   : > { %3187 = vsyncadd (!%p2987_p8), %s2831_s19, 4294966784  ;;  %p18_p11 = scmp.ge.s32.totalorder %s3289_s27, 4   ;;  %s4592_s21 = smov %s3194_s22 }
 0x872   : > { %s4593_s22 = smov %s3198_s23  ;;  %s4594_s23 = smov %s3300_s30 }
 0x873   : > { %s4595_s24 = smov %s3289_s27  ;;  %20 = sbr.rel (!%p18_p11) target bundleno = 5 (0x5), region = 115 }
 0x87a   :  { %2836 = vsyncpa [#allocation4], 1 }
 0x87b   :  { %2838 = vsyncpa [#allocation4 + $0x1], 1 }
 0x87c   :  { %2839 = vsyncpa [#allocation7], 1 }
 0x87d   :  { %2840 = vsyncpa [#allocation5], 1 }
 0x87e   :  { %2842 = vsyncpa [#allocation5 + $0x1], 1 }

</bundles_post_ra>
